<compile_context>
chip_gen: v7x
topology: tpu7x:2x2x1
jax: 0.10.0
libtpu: 0.0.40
codegen_flags: <defaults>
</compile_context>

<pallas_src>
import functools

import jax
import jax.numpy as jnp
from jax.experimental import pallas as pl
from jax.experimental.pallas import tpu as pltpu


# Static network configuration (the `value_dict` used here):
#   spatial_conv: Conv2d(1, H, (H,1)) -> transpose(1,2)   : (B,1,H,W) -> (B,1,H,W)
#   conv1       : Conv2d(1, 4, 3x3, stride 1) -> ReLU -> BatchNorm2d -> MaxPool2d(2,2)
#   linear1     : Linear(4*3*31 -> 32) -> ReLU -> L2 normalize
CC = 4          # conv1 channels_out
KH = KW = 3     # conv1 kernel
OUT_DIM = 32    # linear1 output_dim


def _round_up(x, m):
    return (x + m - 1) // m * m


# ---------------------------------------------------------------------------
# Fused, batched Pallas kernel: one grid step == TB samples, everything in VMEM
# ---------------------------------------------------------------------------
def _stage_net_kernel(x_ref, wsc_ref, scb_ref, cw_ref, wl_ref, lb_ref, o_ref, *, H, W):
    # x_ref  : (TB, H*W)        flattened input samples (lane-dense)
    # wsc_ref: (H*W, H*W)       SpatialConv expanded to a block-diagonal matmul weight
    # scb_ref: (1, H*W)         SpatialConv bias, repeated along width
    # cw_ref : (CC, 10)  SMEM   per-channel conv scalars: [9 taps | conv bias]
    # wl_ref : (CC*HP*(WC-1), OUT_DIM) linear weight (BN + pool-selection folded in)
    # lb_ref : (1, OUT_DIM)     linear bias (BN shift folded in)
    # o_ref  : (TB, OUT_DIM)
    HC, WC = H - KH + 1, W - KW + 1       # conv1 output spatial dims
    HP = HC // 2                           # pooled height
    VW = (HC - 1) * W + WC                 # flattened conv-output frame width

    # --- SpatialConv(1, H, (H,1)) + transpose(1,2): one batched MXU matmul ---
    img = jnp.dot(x_ref[...], wsc_ref[...],
                  preferred_element_type=jnp.float32) + scb_ref[...]   # (TB, H*W)

    # --- 3x3 conv: 9 shifted views of the flattened slab, hoisted & reused by all CC
    #     channels.  View offset di*W + dj; positions p = i*W + j, valid for j < WC. ---
    views = [img[:, di * W + dj: di * W + dj + VW]
             for di in range(KH) for dj in range(KW)]                  # each (TB, VW)

    segs = []
    for c in range(CC):
        # scalar-broadcast FMAs on the VPU (SMEM taps read once per step)
        acc = views[0] * cw_ref[c, 0]
        for t in range(1, KH * KW):
            acc = acc + cw_ref[c, t] * views[t]
        yc = jnp.maximum(acc + cw_ref[c, KH * KW], 0.0)                # bias + ReLU
        # (BatchNorm affine folded into the linear weight/bias host-side.)
        # --- MaxPool 2x2 / stride 2, fused on the same slab ---
        m = jnp.maximum(yc[:, :VW - 1], yc[:, 1:])                     # horizontal pair max
        for hp in range(HP):
            a = m[:, (2 * hp) * W: (2 * hp) * W + WC - 1]              # row 2*hp
            b = m[:, (2 * hp + 1) * W: (2 * hp + 1) * W + WC - 1]      # row 2*hp+1
            segs.append(jnp.maximum(a, b))                             # (TB, WC-1)

    # --- Linear: assemble one pooled-feature slab, one MXU matmul per step.
    #     Valid pooled values sit at even columns of each segment; odd/tail columns
    #     hit zero rows of wl_ref. ---
    feats = jnp.concatenate(segs, axis=1)                              # (TB, CC*HP*(WC-1))
    y = jnp.dot(feats, wl_ref[...],
                preferred_element_type=jnp.float32) + lb_ref[...]      # (TB, OUT_DIM)
    y = jnp.maximum(y, 0.0)                                            # linear ReLU
    # F.normalize(p=2, dim=-1): x / max(||x||, 1e-12) == x * rsqrt(max(||x||^2, 1e-24))
    nrm2 = jnp.sum(y * y, axis=-1, keepdims=True)
    o_ref[...] = y * jax.lax.rsqrt(jnp.maximum(nrm2, 1e-24))
    # TODO(synk): Dropout layers are identity in eval mode (no RNG-based dropping).


# ---------------------------------------------------------------------------
# Wrapper: one pallas_call, TB samples per grid step, both inputs in one launch
# ---------------------------------------------------------------------------
def stage_net_fused(x, params, tb=None):
    """x: (B, H, W) stacked batch; returns (B, OUT_DIM)."""
    B, H, W = x.shape
    xf = x.reshape(B, H * W).astype(jnp.float32)        # lane-dense input layout (free)
    if tb is None:
        # 128 fills full MXU row tiles; tiny test batches just round up to a sublane tile.
        tb = 128 if B >= 128 else _round_up(B, 8)
    bp = _round_up(B, tb)
    if bp != B:
        xf = jnp.pad(xf, ((0, bp - B), (0, 0)))          # zero-pad the batch tail

    wsc, scb = params["wsc_big"], params["scb_flat"]     # (H*W,H*W), (1,H*W)
    cw = params["conv_packed"]                           # (CC, 10) SMEM scalars
    wl, lb = params["lin_w_folded"], params["lin_b_folded"]   # (732,32), (1,32)
    kin = wl.shape[0]

    kernel = functools.partial(_stage_net_kernel, H=H, W=W)
    out = pl.pallas_call(
        kernel,
        out_shape=jax.ShapeDtypeStruct((bp, OUT_DIM), jnp.float32),
        grid=(bp // tb,),
        in_specs=[
            pl.BlockSpec((tb, H * W), lambda i: (i, 0)),              # input block
            pl.BlockSpec((H * W, H * W), lambda i: (0, 0)),           # spatial-conv W
            pl.BlockSpec((1, H * W), lambda i: (0, 0)),               # spatial-conv b
            pl.BlockSpec(memory_space=pltpu.MemorySpace.SMEM),        # conv scalars
            pl.BlockSpec((kin, OUT_DIM), lambda i: (0, 0)),           # linear W (folded)
            pl.BlockSpec((1, OUT_DIM), lambda i: (0, 0)),             # linear b (folded)
        ],
        out_specs=pl.BlockSpec((tb, OUT_DIM), lambda i: (i, 0)),
        compiler_params=pltpu.CompilerParams(
            # NOTE: on v7x, pltpu.CORE_PARALLEL on this axis (with >=2 grid steps)
            # shards batch blocks across both TensorCores.
            dimension_semantics=("parallel",)),
    )(xf, wsc, scb, cw, wl, lb)
    return out[:B]


@jax.jit
def stage_net_forward(input1, input2, params):
    B = input1.shape[0]
    x = jnp.concatenate([input1, input2], axis=0)        # one launch for both inputs
    out = stage_net_fused(x, params)
    return out[:B], out[B:]


# ---------------------------------------------------------------------------
# Deterministic parameters (+ one-time host-side weight re-layout / folding)
# ---------------------------------------------------------------------------
def make_params(height, width, cc_out=CC, out_dim=OUT_DIM):
    key = jax.random.PRNGKey(0)
    ks = jax.random.split(key, 8)
    csc = height                              # spatial_conv channels_out == height
    hc, wc = csc - KH + 1, width - KW + 1     # conv1 output spatial dims
    hp, wp = hc // 2, wc // 2                 # pooled dims
    lin_in = cc_out * hp * wp

    sc_w = 0.1 * jax.random.normal(ks[0], (csc, height), jnp.float32)   # torch (csc,1,H,1)
    sc_b = 0.1 * jax.random.normal(ks[1], (csc,), jnp.float32)

    c_w = 0.1 * jax.random.normal(ks[2], (cc_out, 1, KH, KW), jnp.float32)
    c_b = 0.1 * jax.random.normal(ks[3], (cc_out,), jnp.float32)
    gamma = 1.0 + 0.1 * jax.random.normal(ks[4], (cc_out,), jnp.float32)
    beta = 0.1 * jax.random.normal(ks[5], (cc_out,), jnp.float32)
    eps = 1e-5
    running_mean = jnp.zeros((cc_out,), jnp.float32)
    running_var = jnp.ones((cc_out,), jnp.float32)
    bn_scale = gamma / jnp.sqrt(running_var + eps)
    bn_shift = beta - running_mean * bn_scale

    l_w = 0.05 * jax.random.normal(ks[6], (out_dim, lin_in), jnp.float32)   # torch (out,in)
    l_b = 0.05 * jax.random.normal(ks[7], (out_dim,), jnp.float32)

    params = dict(sc_w=sc_w, sc_b=sc_b, c_w=c_w, c_b=c_b,
                  bn_scale=bn_scale, bn_shift=bn_shift, l_w=l_w, l_b=l_b)

    # --- SpatialConv expanded to a block-diagonal matmul weight (batch on MXU M dim):
    #     wsc_big[h*W + w, c*W + w'] = sc_w[c, h] * (w == w')
    eye_w = jnp.eye(width, dtype=jnp.float32)
    wsc_big = (sc_w.T[:, None, :, None] * eye_w[None, :, None, :]).reshape(
        height * width, csc * width)
    scb_flat = jnp.repeat(sc_b, width)[None, :]                          # (1, csc*W)

    # --- Per-channel conv scalars for SMEM: [9 taps | conv bias] ---
    conv_packed = jnp.concatenate([c_w.reshape(cc_out, KH * KW), c_b[:, None]], axis=1)

    # --- Fold eval-mode BatchNorm (applied after ReLU, before pool) into the linear.
    #     Valid because maxpool commutes with a non-negative-scale per-channel affine.
    assert bool(jnp.all(bn_scale >= 0.0)), "BN fold into linear requires bn_scale >= 0"
    l_w_r = l_w.T.reshape(cc_out, hp, wp, out_dim)           # torch.flatten order (C,Hp,Wp)
    l_w_scaled = l_w_r * bn_scale[:, None, None, None]
    # fold the width-pool "take even column" selection into zero-interleaved rows
    wl4 = jnp.zeros((cc_out, hp, wc - 1, out_dim), jnp.float32)
    wl4 = wl4.at[:, :, 0::2, :].set(l_w_scaled)
    lin_w_folded = wl4.reshape(cc_out * hp * (wc - 1), out_dim)          # (732, 32)
    lin_b_folded = (l_b + jnp.einsum("c,chwo->o", bn_shift, l_w_r))[None, :]

    params.update(wsc_big=wsc_big, scb_flat=scb_flat, conv_packed=conv_packed,
                  lin_w_folded=lin_w_folded, lin_b_folded=lin_b_folded)
    return params


# ---------------------------------------------------------------------------
# Pure-JAX reference (for correctness checking only)
# ---------------------------------------------------------------------------
def stage_net_reference(x, p):
    B, H, W = x.shape
    img = jnp.einsum("ch,bhw->bcw", p["sc_w"], x) + p["sc_b"][None, :, None]  # (B,Csc,W)
    HC, WC = img.shape[1] - KH + 1, W - KW + 1
    k = p["c_w"][:, 0]                                                        # (CC,3,3)
    y = jnp.zeros((B, CC, HC, WC), jnp.float32)
    for di in range(KH):
        for dj in range(KW):
            y = y + k[None, :, di, dj, None, None] * img[:, None, di:di + HC, dj:dj + WC]
    y = jnp.maximum(y + p["c_b"][None, :, None, None], 0.0)
    y = y * p["bn_scale"][None, :, None, None] + p["bn_shift"][None, :, None, None]
    HP, WP = HC // 2, WC // 2
    y = y[:, :, :2 * HP, :2 * WP].reshape(B, CC, HP, 2, WP, 2).max(axis=(3, 5))
    out = y.reshape(B, -1) @ p["l_w"].T + p["l_b"][None, :]
    out = jnp.maximum(out, 0.0)
    nrm = jnp.sqrt(jnp.sum(out * out, axis=-1, keepdims=True))
    return out / jnp.maximum(nrm, 1e-12)


if __name__ == "__main__":
    B, H, W = 2, 8, 64                       # channels_in=1, height=8, width=64
    # derived: spatial_conv -> (B,1,8,64); conv 3x3 -> (4,6,62); pool 2x2 -> (4,3,31)
    params = make_params(height=H, width=W)

    key = jax.random.PRNGKey(0)
    k1, k2 = jax.random.split(key)
    input1 = jax.random.normal(k1, (B, H, W), jnp.float32)
    input2 = jax.random.normal(k2, (B, H, W), jnp.float32)

    out1, out2 = stage_net_forward(input1, input2, params)
    jax.block_until_ready((out1, out2))
    assert out1.shape == (B, OUT_DIM) and out2.shape == (B, OUT_DIM)

    # correctness check against the pure-JAX reference
    ref1 = stage_net_reference(input1, params)
    ref2 = stage_net_reference(input2, params)
    err = max(float(jnp.max(jnp.abs(out1 - ref1))), float(jnp.max(jnp.abs(out2 - ref2))))
    assert err < 2e-3, f"mismatch vs reference: max abs err = {err}"
    print("KERNEL_OK")
</pallas_src>

<mosaic_0001>
module attributes {stable_mosaic.version = 11 : i64} {
  func.func @_stage_net_kernel(%arg0: i32, %arg1: memref<8x512xf32, #tpu.memory_space<vmem>>, %arg2: memref<512x512xf32, #tpu.memory_space<vmem>>, %arg3: memref<1x512xf32, #tpu.memory_space<vmem>>, %arg4: memref<4x10xf32, #tpu.memory_space<smem>>, %arg5: memref<732x32xf32, #tpu.memory_space<vmem>>, %arg6: memref<1x32xf32, #tpu.memory_space<vmem>>, %arg7: memref<8x32xf32, #tpu.memory_space<vmem>>) attributes {dimension_semantics = [#tpu.dimension_semantics<parallel>], iteration_bounds = array<i64: 1>, scalar_prefetch = 0 : i64, scratch_operands = 0 : i64, tpu.core_type = #tpu.core_type<tc>, window_params = [{transform_indices = @transform_0, window_bounds = array<i64: 8, 512>}, {pipeline_mode = #tpu.pipeline_mode<synchronous>, transform_indices = @transform_1, window_bounds = array<i64: 512, 512>}, {pipeline_mode = #tpu.pipeline_mode<synchronous>, transform_indices = @transform_2, window_bounds = array<i64: 1, 512>}, {transform_indices = @transform_3, window_bounds = array<i64: 4, 10>}, {pipeline_mode = #tpu.pipeline_mode<synchronous>, transform_indices = @transform_4, window_bounds = array<i64: 732, 32>}, {pipeline_mode = #tpu.pipeline_mode<synchronous>, transform_indices = @transform_5, window_bounds = array<i64: 1, 32>}, {transform_indices = @transform_6, window_bounds = array<i64: 8, 32>}]} {
    %c0 = arith.constant 0 : index
    %c0_0 = arith.constant 0 : index
    %0 = vector.load %arg1[%c0, %c0_0] : memref<8x512xf32, #tpu.memory_space<vmem>>, vector<8x512xf32>
    %c0_1 = arith.constant 0 : index
    %c0_2 = arith.constant 0 : index
    %1 = vector.load %arg2[%c0_1, %c0_2] : memref<512x512xf32, #tpu.memory_space<vmem>>, vector<512x512xf32>
    %cst = arith.constant dense<0.000000e+00> : vector<8x512xf32>
    %2 = tpu.matmul %0, %1, %cst {dimension_numbers = #tpu.dot_dimension_numbers<[1], [0], [0], [1], [0, 0, 1, 1], [], []>} : vector<8x512xf32>, vector<512x512xf32>, vector<8x512xf32> -> vector<8x512xf32>
    %c0_3 = arith.constant 0 : index
    %c0_4 = arith.constant 0 : index
    %3 = vector.load %arg3[%c0_3, %c0_4] : memref<1x512xf32, #tpu.memory_space<vmem>>, vector<1x512xf32>
    %4 = vector.broadcast %3 : vector<1x512xf32> to vector<8x512xf32>
    %5 = arith.addf %2, %4 : vector<8x512xf32>
    %6 = vector.extract_strided_slice %5 {offsets = [0, 0], sizes = [8, 382], strides = [1, 1]} : vector<8x512xf32> to vector<8x382xf32>
    %7 = vector.extract_strided_slice %5 {offsets = [0, 1], sizes = [8, 382], strides = [1, 1]} : vector<8x512xf32> to vector<8x382xf32>
    %8 = vector.extract_strided_slice %5 {offsets = [0, 2], sizes = [8, 382], strides = [1, 1]} : vector<8x512xf32> to vector<8x382xf32>
    %9 = vector.extract_strided_slice %5 {offsets = [0, 64], sizes = [8, 382], strides = [1, 1]} : vector<8x512xf32> to vector<8x382xf32>
    %10 = vector.extract_strided_slice %5 {offsets = [0, 65], sizes = [8, 382], strides = [1, 1]} : vector<8x512xf32> to vector<8x382xf32>
    %11 = vector.extract_strided_slice %5 {offsets = [0, 66], sizes = [8, 382], strides = [1, 1]} : vector<8x512xf32> to vector<8x382xf32>
    %12 = vector.extract_strided_slice %5 {offsets = [0, 128], sizes = [8, 382], strides = [1, 1]} : vector<8x512xf32> to vector<8x382xf32>
    %13 = vector.extract_strided_slice %5 {offsets = [0, 129], sizes = [8, 382], strides = [1, 1]} : vector<8x512xf32> to vector<8x382xf32>
    %14 = vector.extract_strided_slice %5 {offsets = [0, 130], sizes = [8, 382], strides = [1, 1]} : vector<8x512xf32> to vector<8x382xf32>
    %c0_5 = arith.constant 0 : index
    %c0_6 = arith.constant 0 : index
    %15 = memref.load %arg4[%c0_5, %c0_6] : memref<4x10xf32, #tpu.memory_space<smem>>
    %16 = vector.broadcast %15 : f32 to vector<8x382xf32>
    %17 = arith.mulf %6, %16 : vector<8x382xf32>
    %c0_7 = arith.constant 0 : index
    %c1 = arith.constant 1 : index
    %18 = memref.load %arg4[%c0_7, %c1] : memref<4x10xf32, #tpu.memory_space<smem>>
    %19 = vector.broadcast %18 : f32 to vector<8x382xf32>
    %20 = arith.mulf %19, %7 : vector<8x382xf32>
    %21 = arith.addf %17, %20 : vector<8x382xf32>
    %c0_8 = arith.constant 0 : index
    %c2 = arith.constant 2 : index
    %22 = memref.load %arg4[%c0_8, %c2] : memref<4x10xf32, #tpu.memory_space<smem>>
    %23 = vector.broadcast %22 : f32 to vector<8x382xf32>
    %24 = arith.mulf %23, %8 : vector<8x382xf32>
    %25 = arith.addf %21, %24 : vector<8x382xf32>
    %c0_9 = arith.constant 0 : index
    %c3 = arith.constant 3 : index
    %26 = memref.load %arg4[%c0_9, %c3] : memref<4x10xf32, #tpu.memory_space<smem>>
    %27 = vector.broadcast %26 : f32 to vector<8x382xf32>
    %28 = arith.mulf %27, %9 : vector<8x382xf32>
    %29 = arith.addf %25, %28 : vector<8x382xf32>
    %c0_10 = arith.constant 0 : index
    %c4 = arith.constant 4 : index
    %30 = memref.load %arg4[%c0_10, %c4] : memref<4x10xf32, #tpu.memory_space<smem>>
    %31 = vector.broadcast %30 : f32 to vector<8x382xf32>
    %32 = arith.mulf %31, %10 : vector<8x382xf32>
    %33 = arith.addf %29, %32 : vector<8x382xf32>
    %c0_11 = arith.constant 0 : index
    %c5 = arith.constant 5 : index
    %34 = memref.load %arg4[%c0_11, %c5] : memref<4x10xf32, #tpu.memory_space<smem>>
    %35 = vector.broadcast %34 : f32 to vector<8x382xf32>
    %36 = arith.mulf %35, %11 : vector<8x382xf32>
    %37 = arith.addf %33, %36 : vector<8x382xf32>
    %c0_12 = arith.constant 0 : index
    %c6 = arith.constant 6 : index
    %38 = memref.load %arg4[%c0_12, %c6] : memref<4x10xf32, #tpu.memory_space<smem>>
    %39 = vector.broadcast %38 : f32 to vector<8x382xf32>
    %40 = arith.mulf %39, %12 : vector<8x382xf32>
    %41 = arith.addf %37, %40 : vector<8x382xf32>
    %c0_13 = arith.constant 0 : index
    %c7 = arith.constant 7 : index
    %42 = memref.load %arg4[%c0_13, %c7] : memref<4x10xf32, #tpu.memory_space<smem>>
    %43 = vector.broadcast %42 : f32 to vector<8x382xf32>
    %44 = arith.mulf %43, %13 : vector<8x382xf32>
    %45 = arith.addf %41, %44 : vector<8x382xf32>
    %c0_14 = arith.constant 0 : index
    %c8 = arith.constant 8 : index
    %46 = memref.load %arg4[%c0_14, %c8] : memref<4x10xf32, #tpu.memory_space<smem>>
    %47 = vector.broadcast %46 : f32 to vector<8x382xf32>
    %48 = arith.mulf %47, %14 : vector<8x382xf32>
    %49 = arith.addf %45, %48 : vector<8x382xf32>
    %c0_15 = arith.constant 0 : index
    %c9 = arith.constant 9 : index
    %50 = memref.load %arg4[%c0_15, %c9] : memref<4x10xf32, #tpu.memory_space<smem>>
    %51 = vector.broadcast %50 : f32 to vector<8x382xf32>
    %52 = arith.addf %49, %51 : vector<8x382xf32>
    %cst_16 = arith.constant 0.000000e+00 : f32
    %53 = vector.broadcast %cst_16 : f32 to vector<8x382xf32>
    %54 = arith.maximumf %52, %53 : vector<8x382xf32>
    %55 = vector.extract_strided_slice %54 {offsets = [0, 0], sizes = [8, 381], strides = [1, 1]} : vector<8x382xf32> to vector<8x381xf32>
    %56 = vector.extract_strided_slice %54 {offsets = [0, 1], sizes = [8, 381], strides = [1, 1]} : vector<8x382xf32> to vector<8x381xf32>
    %57 = arith.maximumf %55, %56 : vector<8x381xf32>
    %58 = vector.extract_strided_slice %57 {offsets = [0, 0], sizes = [8, 61], strides = [1, 1]} : vector<8x381xf32> to vector<8x61xf32>
    %59 = vector.extract_strided_slice %57 {offsets = [0, 64], sizes = [8, 61], strides = [1, 1]} : vector<8x381xf32> to vector<8x61xf32>
    %60 = arith.maximumf %58, %59 : vector<8x61xf32>
    %61 = vector.extract_strided_slice %57 {offsets = [0, 128], sizes = [8, 61], strides = [1, 1]} : vector<8x381xf32> to vector<8x61xf32>
    %62 = vector.extract_strided_slice %57 {offsets = [0, 192], sizes = [8, 61], strides = [1, 1]} : vector<8x381xf32> to vector<8x61xf32>
    %63 = arith.maximumf %61, %62 : vector<8x61xf32>
    %64 = vector.extract_strided_slice %57 {offsets = [0, 256], sizes = [8, 61], strides = [1, 1]} : vector<8x381xf32> to vector<8x61xf32>
    %65 = vector.extract_strided_slice %57 {offsets = [0, 320], sizes = [8, 61], strides = [1, 1]} : vector<8x381xf32> to vector<8x61xf32>
    %66 = arith.maximumf %64, %65 : vector<8x61xf32>
    %c1_17 = arith.constant 1 : index
    %c0_18 = arith.constant 0 : index
    %67 = memref.load %arg4[%c1_17, %c0_18] : memref<4x10xf32, #tpu.memory_space<smem>>
    %68 = vector.broadcast %67 : f32 to vector<8x382xf32>
    %69 = arith.mulf %6, %68 : vector<8x382xf32>
    %c1_19 = arith.constant 1 : index
    %c1_20 = arith.constant 1 : index
    %70 = memref.load %arg4[%c1_19, %c1_20] : memref<4x10xf32, #tpu.memory_space<smem>>
    %71 = vector.broadcast %70 : f32 to vector<8x382xf32>
    %72 = arith.mulf %71, %7 : vector<8x382xf32>
    %73 = arith.addf %69, %72 : vector<8x382xf32>
    %c1_21 = arith.constant 1 : index
    %c2_22 = arith.constant 2 : index
    %74 = memref.load %arg4[%c1_21, %c2_22] : memref<4x10xf32, #tpu.memory_space<smem>>
    %75 = vector.broadcast %74 : f32 to vector<8x382xf32>
    %76 = arith.mulf %75, %8 : vector<8x382xf32>
    %77 = arith.addf %73, %76 : vector<8x382xf32>
    %c1_23 = arith.constant 1 : index
    %c3_24 = arith.constant 3 : index
    %78 = memref.load %arg4[%c1_23, %c3_24] : memref<4x10xf32, #tpu.memory_space<smem>>
    %79 = vector.broadcast %78 : f32 to vector<8x382xf32>
    %80 = arith.mulf %79, %9 : vector<8x382xf32>
    %81 = arith.addf %77, %80 : vector<8x382xf32>
    %c1_25 = arith.constant 1 : index
    %c4_26 = arith.constant 4 : index
    %82 = memref.load %arg4[%c1_25, %c4_26] : memref<4x10xf32, #tpu.memory_space<smem>>
    %83 = vector.broadcast %82 : f32 to vector<8x382xf32>
    %84 = arith.mulf %83, %10 : vector<8x382xf32>
    %85 = arith.addf %81, %84 : vector<8x382xf32>
    %c1_27 = arith.constant 1 : index
    %c5_28 = arith.constant 5 : index
    %86 = memref.load %arg4[%c1_27, %c5_28] : memref<4x10xf32, #tpu.memory_space<smem>>
    %87 = vector.broadcast %86 : f32 to vector<8x382xf32>
    %88 = arith.mulf %87, %11 : vector<8x382xf32>
    %89 = arith.addf %85, %88 : vector<8x382xf32>
    %c1_29 = arith.constant 1 : index
    %c6_30 = arith.constant 6 : index
    %90 = memref.load %arg4[%c1_29, %c6_30] : memref<4x10xf32, #tpu.memory_space<smem>>
    %91 = vector.broadcast %90 : f32 to vector<8x382xf32>
    %92 = arith.mulf %91, %12 : vector<8x382xf32>
    %93 = arith.addf %89, %92 : vector<8x382xf32>
    %c1_31 = arith.constant 1 : index
    %c7_32 = arith.constant 7 : index
    %94 = memref.load %arg4[%c1_31, %c7_32] : memref<4x10xf32, #tpu.memory_space<smem>>
    %95 = vector.broadcast %94 : f32 to vector<8x382xf32>
    %96 = arith.mulf %95, %13 : vector<8x382xf32>
    %97 = arith.addf %93, %96 : vector<8x382xf32>
    %c1_33 = arith.constant 1 : index
    %c8_34 = arith.constant 8 : index
    %98 = memref.load %arg4[%c1_33, %c8_34] : memref<4x10xf32, #tpu.memory_space<smem>>
    %99 = vector.broadcast %98 : f32 to vector<8x382xf32>
    %100 = arith.mulf %99, %14 : vector<8x382xf32>
    %101 = arith.addf %97, %100 : vector<8x382xf32>
    %c1_35 = arith.constant 1 : index
    %c9_36 = arith.constant 9 : index
    %102 = memref.load %arg4[%c1_35, %c9_36] : memref<4x10xf32, #tpu.memory_space<smem>>
    %103 = vector.broadcast %102 : f32 to vector<8x382xf32>
    %104 = arith.addf %101, %103 : vector<8x382xf32>
    %cst_37 = arith.constant 0.000000e+00 : f32
    %105 = vector.broadcast %cst_37 : f32 to vector<8x382xf32>
    %106 = arith.maximumf %104, %105 : vector<8x382xf32>
    %107 = vector.extract_strided_slice %106 {offsets = [0, 0], sizes = [8, 381], strides = [1, 1]} : vector<8x382xf32> to vector<8x381xf32>
    %108 = vector.extract_strided_slice %106 {offsets = [0, 1], sizes = [8, 381], strides = [1, 1]} : vector<8x382xf32> to vector<8x381xf32>
    %109 = arith.maximumf %107, %108 : vector<8x381xf32>
    %110 = vector.extract_strided_slice %109 {offsets = [0, 0], sizes = [8, 61], strides = [1, 1]} : vector<8x381xf32> to vector<8x61xf32>
    %111 = vector.extract_strided_slice %109 {offsets = [0, 64], sizes = [8, 61], strides = [1, 1]} : vector<8x381xf32> to vector<8x61xf32>
    %112 = arith.maximumf %110, %111 : vector<8x61xf32>
    %113 = vector.extract_strided_slice %109 {offsets = [0, 128], sizes = [8, 61], strides = [1, 1]} : vector<8x381xf32> to vector<8x61xf32>
    %114 = vector.extract_strided_slice %109 {offsets = [0, 192], sizes = [8, 61], strides = [1, 1]} : vector<8x381xf32> to vector<8x61xf32>
    %115 = arith.maximumf %113, %114 : vector<8x61xf32>
    %116 = vector.extract_strided_slice %109 {offsets = [0, 256], sizes = [8, 61], strides = [1, 1]} : vector<8x381xf32> to vector<8x61xf32>
    %117 = vector.extract_strided_slice %109 {offsets = [0, 320], sizes = [8, 61], strides = [1, 1]} : vector<8x381xf32> to vector<8x61xf32>
    %118 = arith.maximumf %116, %117 : vector<8x61xf32>
    %c2_38 = arith.constant 2 : index
    %c0_39 = arith.constant 0 : index
    %119 = memref.load %arg4[%c2_38, %c0_39] : memref<4x10xf32, #tpu.memory_space<smem>>
    %120 = vector.broadcast %119 : f32 to vector<8x382xf32>
    %121 = arith.mulf %6, %120 : vector<8x382xf32>
    %c2_40 = arith.constant 2 : index
    %c1_41 = arith.constant 1 : index
    %122 = memref.load %arg4[%c2_40, %c1_41] : memref<4x10xf32, #tpu.memory_space<smem>>
    %123 = vector.broadcast %122 : f32 to vector<8x382xf32>
    %124 = arith.mulf %123, %7 : vector<8x382xf32>
    %125 = arith.addf %121, %124 : vector<8x382xf32>
    %c2_42 = arith.constant 2 : index
    %c2_43 = arith.constant 2 : index
    %126 = memref.load %arg4[%c2_42, %c2_43] : memref<4x10xf32, #tpu.memory_space<smem>>
    %127 = vector.broadcast %126 : f32 to vector<8x382xf32>
    %128 = arith.mulf %127, %8 : vector<8x382xf32>
    %129 = arith.addf %125, %128 : vector<8x382xf32>
    %c2_44 = arith.constant 2 : index
    %c3_45 = arith.constant 3 : index
    %130 = memref.load %arg4[%c2_44, %c3_45] : memref<4x10xf32, #tpu.memory_space<smem>>
    %131 = vector.broadcast %130 : f32 to vector<8x382xf32>
    %132 = arith.mulf %131, %9 : vector<8x382xf32>
    %133 = arith.addf %129, %132 : vector<8x382xf32>
    %c2_46 = arith.constant 2 : index
    %c4_47 = arith.constant 4 : index
    %134 = memref.load %arg4[%c2_46, %c4_47] : memref<4x10xf32, #tpu.memory_space<smem>>
    %135 = vector.broadcast %134 : f32 to vector<8x382xf32>
    %136 = arith.mulf %135, %10 : vector<8x382xf32>
    %137 = arith.addf %133, %136 : vector<8x382xf32>
    %c2_48 = arith.constant 2 : index
    %c5_49 = arith.constant 5 : index
    %138 = memref.load %arg4[%c2_48, %c5_49] : memref<4x10xf32, #tpu.memory_space<smem>>
    %139 = vector.broadcast %138 : f32 to vector<8x382xf32>
    %140 = arith.mulf %139, %11 : vector<8x382xf32>
    %141 = arith.addf %137, %140 : vector<8x382xf32>
    %c2_50 = arith.constant 2 : index
    %c6_51 = arith.constant 6 : index
    %142 = memref.load %arg4[%c2_50, %c6_51] : memref<4x10xf32, #tpu.memory_space<smem>>
    %143 = vector.broadcast %142 : f32 to vector<8x382xf32>
    %144 = arith.mulf %143, %12 : vector<8x382xf32>
    %145 = arith.addf %141, %144 : vector<8x382xf32>
    %c2_52 = arith.constant 2 : index
    %c7_53 = arith.constant 7 : index
    %146 = memref.load %arg4[%c2_52, %c7_53] : memref<4x10xf32, #tpu.memory_space<smem>>
    %147 = vector.broadcast %146 : f32 to vector<8x382xf32>
    %148 = arith.mulf %147, %13 : vector<8x382xf32>
    %149 = arith.addf %145, %148 : vector<8x382xf32>
    %c2_54 = arith.constant 2 : index
    %c8_55 = arith.constant 8 : index
    %150 = memref.load %arg4[%c2_54, %c8_55] : memref<4x10xf32, #tpu.memory_space<smem>>
    %151 = vector.broadcast %150 : f32 to vector<8x382xf32>
    %152 = arith.mulf %151, %14 : vector<8x382xf32>
    %153 = arith.addf %149, %152 : vector<8x382xf32>
    %c2_56 = arith.constant 2 : index
    %c9_57 = arith.constant 9 : index
    %154 = memref.load %arg4[%c2_56, %c9_57] : memref<4x10xf32, #tpu.memory_space<smem>>
    %155 = vector.broadcast %154 : f32 to vector<8x382xf32>
    %156 = arith.addf %153, %155 : vector<8x382xf32>
    %cst_58 = arith.constant 0.000000e+00 : f32
    %157 = vector.broadcast %cst_58 : f32 to vector<8x382xf32>
    %158 = arith.maximumf %156, %157 : vector<8x382xf32>
    %159 = vector.extract_strided_slice %158 {offsets = [0, 0], sizes = [8, 381], strides = [1, 1]} : vector<8x382xf32> to vector<8x381xf32>
    %160 = vector.extract_strided_slice %158 {offsets = [0, 1], sizes = [8, 381], strides = [1, 1]} : vector<8x382xf32> to vector<8x381xf32>
    %161 = arith.maximumf %159, %160 : vector<8x381xf32>
    %162 = vector.extract_strided_slice %161 {offsets = [0, 0], sizes = [8, 61], strides = [1, 1]} : vector<8x381xf32> to vector<8x61xf32>
    %163 = vector.extract_strided_slice %161 {offsets = [0, 64], sizes = [8, 61], strides = [1, 1]} : vector<8x381xf32> to vector<8x61xf32>
    %164 = arith.maximumf %162, %163 : vector<8x61xf32>
    %165 = vector.extract_strided_slice %161 {offsets = [0, 128], sizes = [8, 61], strides = [1, 1]} : vector<8x381xf32> to vector<8x61xf32>
    %166 = vector.extract_strided_slice %161 {offsets = [0, 192], sizes = [8, 61], strides = [1, 1]} : vector<8x381xf32> to vector<8x61xf32>
    %167 = arith.maximumf %165, %166 : vector<8x61xf32>
    %168 = vector.extract_strided_slice %161 {offsets = [0, 256], sizes = [8, 61], strides = [1, 1]} : vector<8x381xf32> to vector<8x61xf32>
    %169 = vector.extract_strided_slice %161 {offsets = [0, 320], sizes = [8, 61], strides = [1, 1]} : vector<8x381xf32> to vector<8x61xf32>
    %170 = arith.maximumf %168, %169 : vector<8x61xf32>
    %c3_59 = arith.constant 3 : index
    %c0_60 = arith.constant 0 : index
    %171 = memref.load %arg4[%c3_59, %c0_60] : memref<4x10xf32, #tpu.memory_space<smem>>
    %172 = vector.broadcast %171 : f32 to vector<8x382xf32>
    %173 = arith.mulf %6, %172 : vector<8x382xf32>
    %c3_61 = arith.constant 3 : index
    %c1_62 = arith.constant 1 : index
    %174 = memref.load %arg4[%c3_61, %c1_62] : memref<4x10xf32, #tpu.memory_space<smem>>
    %175 = vector.broadcast %174 : f32 to vector<8x382xf32>
    %176 = arith.mulf %175, %7 : vector<8x382xf32>
    %177 = arith.addf %173, %176 : vector<8x382xf32>
    %c3_63 = arith.constant 3 : index
    %c2_64 = arith.constant 2 : index
    %178 = memref.load %arg4[%c3_63, %c2_64] : memref<4x10xf32, #tpu.memory_space<smem>>
    %179 = vector.broadcast %178 : f32 to vector<8x382xf32>
    %180 = arith.mulf %179, %8 : vector<8x382xf32>
    %181 = arith.addf %177, %180 : vector<8x382xf32>
    %c3_65 = arith.constant 3 : index
    %c3_66 = arith.constant 3 : index
    %182 = memref.load %arg4[%c3_65, %c3_66] : memref<4x10xf32, #tpu.memory_space<smem>>
    %183 = vector.broadcast %182 : f32 to vector<8x382xf32>
    %184 = arith.mulf %183, %9 : vector<8x382xf32>
    %185 = arith.addf %181, %184 : vector<8x382xf32>
    %c3_67 = arith.constant 3 : index
    %c4_68 = arith.constant 4 : index
    %186 = memref.load %arg4[%c3_67, %c4_68] : memref<4x10xf32, #tpu.memory_space<smem>>
    %187 = vector.broadcast %186 : f32 to vector<8x382xf32>
    %188 = arith.mulf %187, %10 : vector<8x382xf32>
    %189 = arith.addf %185, %188 : vector<8x382xf32>
    %c3_69 = arith.constant 3 : index
    %c5_70 = arith.constant 5 : index
    %190 = memref.load %arg4[%c3_69, %c5_70] : memref<4x10xf32, #tpu.memory_space<smem>>
    %191 = vector.broadcast %190 : f32 to vector<8x382xf32>
    %192 = arith.mulf %191, %11 : vector<8x382xf32>
    %193 = arith.addf %189, %192 : vector<8x382xf32>
    %c3_71 = arith.constant 3 : index
    %c6_72 = arith.constant 6 : index
    %194 = memref.load %arg4[%c3_71, %c6_72] : memref<4x10xf32, #tpu.memory_space<smem>>
    %195 = vector.broadcast %194 : f32 to vector<8x382xf32>
    %196 = arith.mulf %195, %12 : vector<8x382xf32>
    %197 = arith.addf %193, %196 : vector<8x382xf32>
    %c3_73 = arith.constant 3 : index
    %c7_74 = arith.constant 7 : index
    %198 = memref.load %arg4[%c3_73, %c7_74] : memref<4x10xf32, #tpu.memory_space<smem>>
    %199 = vector.broadcast %198 : f32 to vector<8x382xf32>
    %200 = arith.mulf %199, %13 : vector<8x382xf32>
    %201 = arith.addf %197, %200 : vector<8x382xf32>
    %c3_75 = arith.constant 3 : index
    %c8_76 = arith.constant 8 : index
    %202 = memref.load %arg4[%c3_75, %c8_76] : memref<4x10xf32, #tpu.memory_space<smem>>
    %203 = vector.broadcast %202 : f32 to vector<8x382xf32>
    %204 = arith.mulf %203, %14 : vector<8x382xf32>
    %205 = arith.addf %201, %204 : vector<8x382xf32>
    %c3_77 = arith.constant 3 : index
    %c9_78 = arith.constant 9 : index
    %206 = memref.load %arg4[%c3_77, %c9_78] : memref<4x10xf32, #tpu.memory_space<smem>>
    %207 = vector.broadcast %206 : f32 to vector<8x382xf32>
    %208 = arith.addf %205, %207 : vector<8x382xf32>
    %cst_79 = arith.constant 0.000000e+00 : f32
    %209 = vector.broadcast %cst_79 : f32 to vector<8x382xf32>
    %210 = arith.maximumf %208, %209 : vector<8x382xf32>
    %211 = vector.extract_strided_slice %210 {offsets = [0, 0], sizes = [8, 381], strides = [1, 1]} : vector<8x382xf32> to vector<8x381xf32>
    %212 = vector.extract_strided_slice %210 {offsets = [0, 1], sizes = [8, 381], strides = [1, 1]} : vector<8x382xf32> to vector<8x381xf32>
    %213 = arith.maximumf %211, %212 : vector<8x381xf32>
    %214 = vector.extract_strided_slice %213 {offsets = [0, 0], sizes = [8, 61], strides = [1, 1]} : vector<8x381xf32> to vector<8x61xf32>
    %215 = vector.extract_strided_slice %213 {offsets = [0, 64], sizes = [8, 61], strides = [1, 1]} : vector<8x381xf32> to vector<8x61xf32>
    %216 = arith.maximumf %214, %215 : vector<8x61xf32>
    %217 = vector.extract_strided_slice %213 {offsets = [0, 128], sizes = [8, 61], strides = [1, 1]} : vector<8x381xf32> to vector<8x61xf32>
    %218 = vector.extract_strided_slice %213 {offsets = [0, 192], sizes = [8, 61], strides = [1, 1]} : vector<8x381xf32> to vector<8x61xf32>
    %219 = arith.maximumf %217, %218 : vector<8x61xf32>
    %220 = vector.extract_strided_slice %213 {offsets = [0, 256], sizes = [8, 61], strides = [1, 1]} : vector<8x381xf32> to vector<8x61xf32>
    %221 = vector.extract_strided_slice %213 {offsets = [0, 320], sizes = [8, 61], strides = [1, 1]} : vector<8x381xf32> to vector<8x61xf32>
    %222 = arith.maximumf %220, %221 : vector<8x61xf32>
    %223 = tpu.concatenate %60, %63, %66, %112, %115, %118, %164, %167, %170, %216, %219, %222 in 1 : vector<8x61xf32>, vector<8x61xf32>, vector<8x61xf32>, vector<8x61xf32>, vector<8x61xf32>, vector<8x61xf32>, vector<8x61xf32>, vector<8x61xf32>, vector<8x61xf32>, vector<8x61xf32>, vector<8x61xf32>, vector<8x61xf32> -> vector<8x732xf32>
    %c0_80 = arith.constant 0 : index
    %c0_81 = arith.constant 0 : index
    %224 = vector.load %arg5[%c0_80, %c0_81] : memref<732x32xf32, #tpu.memory_space<vmem>>, vector<732x32xf32>
    %cst_82 = arith.constant dense<0.000000e+00> : vector<8x32xf32>
    %225 = tpu.matmul %223, %224, %cst_82 {dimension_numbers = #tpu.dot_dimension_numbers<[1], [0], [0], [1], [0, 0, 1, 1], [], []>} : vector<8x732xf32>, vector<732x32xf32>, vector<8x32xf32> -> vector<8x32xf32>
    %c0_83 = arith.constant 0 : index
    %c0_84 = arith.constant 0 : index
    %226 = vector.load %arg6[%c0_83, %c0_84] : memref<1x32xf32, #tpu.memory_space<vmem>>, vector<1x32xf32>
    %227 = vector.broadcast %226 : vector<1x32xf32> to vector<8x32xf32>
    %228 = arith.addf %225, %227 : vector<8x32xf32>
    %cst_85 = arith.constant 0.000000e+00 : f32
    %229 = vector.broadcast %cst_85 : f32 to vector<8x32xf32>
    %230 = arith.maximumf %228, %229 : vector<8x32xf32>
    %231 = arith.mulf %230, %230 : vector<8x32xf32>
    %cst_86 = arith.constant dense<0.000000e+00> : vector<8xf32>
    %232 = vector.multi_reduction <add>, %231, %cst_86 [1] : vector<8x32xf32> to vector<8xf32>
    %233 = vector.shape_cast %232 : vector<8xf32> to vector<8x1xf32>
    %cst_87 = arith.constant 1.000000e-24 : f32
    %234 = vector.broadcast %cst_87 : f32 to vector<8x1xf32>
    %235 = arith.maximumf %233, %234 : vector<8x1xf32>
    %236 = math.rsqrt %235 : vector<8x1xf32>
    %237 = vector.broadcast %236 : vector<8x1xf32> to vector<8x32xf32>
    %238 = arith.mulf %230, %237 : vector<8x32xf32>
    %c0_88 = arith.constant 0 : index
    %c0_89 = arith.constant 0 : index
    %239 = vector.load %arg7[%c0_88, %c0_89] : memref<8x32xf32, #tpu.memory_space<vmem>>, vector<8x32xf32>
    tpu.vector_store %arg7[%c0_88, %c0_89], %238 {strides = array<i32>} : memref<8x32xf32, #tpu.memory_space<vmem>>, vector<8x32xf32>,
    return
  }
  func.func @transform_0(%arg0: i32) -> (i32, i32) {
    %c0_i32 = arith.constant 0 : i32
    %c0_i32_0 = arith.constant 0 : i32
    return %arg0, %c0_i32 : i32, i32
  }
  func.func @transform_1(%arg0: i32) -> (i32, i32) {
    %c0_i32 = arith.constant 0 : i32
    %c0_i32_0 = arith.constant 0 : i32
    %c0_i32_1 = arith.constant 0 : i32
    return %c0_i32, %c0_i32_0 : i32, i32
  }
  func.func @transform_2(%arg0: i32) -> (i32, i32) {
    %c0_i32 = arith.constant 0 : i32
    %c0_i32_0 = arith.constant 0 : i32
    %c0_i32_1 = arith.constant 0 : i32
    return %c0_i32, %c0_i32_0 : i32, i32
  }
  func.func @transform_3(%arg0: i32) -> (i32, i32) {
    %c0_i32 = arith.constant 0 : i32
    %c0_i32_0 = arith.constant 0 : i32
    %c0_i32_1 = arith.constant 0 : i32
    return %c0_i32, %c0_i32_0 : i32, i32
  }
  func.func @transform_4(%arg0: i32) -> (i32, i32) {
    %c0_i32 = arith.constant 0 : i32
    %c0_i32_0 = arith.constant 0 : i32
    %c0_i32_1 = arith.constant 0 : i32
    return %c0_i32, %c0_i32_0 : i32, i32
  }
  func.func @transform_5(%arg0: i32) -> (i32, i32) {
    %c0_i32 = arith.constant 0 : i32
    %c0_i32_0 = arith.constant 0 : i32
    %c0_i32_1 = arith.constant 0 : i32
    return %c0_i32, %c0_i32_0 : i32, i32
  }
  func.func @transform_6(%arg0: i32) -> (i32, i32) {
    %c0_i32 = arith.constant 0 : i32
    %c0_i32_0 = arith.constant 0 : i32
    return %arg0, %c0_i32 : i32, i32
  }
}

</mosaic_0001>

<bundles_post_ra>
// kernel: stage_net_forward.1
= control target key start
LH: loop header
LB: loop body
LE: loop exit
PB: predicated region body
PF: predicated region fallthrough
CT: control target
= control target key end

     0   :  { %11 = vsyncpa [#allocation3], 0  ;;  %s3885_s0 = inlined_call_operand.vmem [shape: f32[8,512], index: 0, kind: input, shape index: {}]   ;;  %s3886_s1 = inlined_call_operand.hbm [shape: f32[512,512], index: 1, kind: input, shape index: {}]   ;;  %s3887_s2 = inlined_call_operand.vmem [shape: f32[1,512], index: 2, kind: input, shape index: {}]   ;;  %s3888_s3 = inlined_call_operand.vmem [shape: f32[4,10], index: 3, kind: input, shape index: {}]   ;;  %s3889_s4 = inlined_call_operand.vmem [shape: f32[732,32], index: 4, kind: input, shape index: {}]   ;;  %s3890_s5 = inlined_call_operand.vmem [shape: f32[1,32], index: 5, kind: input, shape index: {}]   ;;  %s3891_s6 = inlined_call_operand.vmem [shape: f32[8,32], index: 6, kind: output, shape index: {}]  }
   0x1   :  { %12 = vsyncpa [#allocation4], 0  ;;  %s2488_s21 = smov [#allocation2]   ;;  %s35_s25 = sshll.u32 %s3888_s3, 4  ;;  %s36_s25 = int_to_ptr.vmem [resolvable:$true] %s35_s25 }
   0x2   :  { %s20_s22 = sshll.u32 %s2488_s21, 4  ;;  %s2450_s28 = scalar_lea.hbm %s3886_s1, 32768  ;;  %s21_s22 = int_to_ptr.vmem [resolvable:$true] %s20_s22 }
   0x3   :  { %p2451_p0 = scmp.ne.s32.totalorder %s3886_s1, %s2450_s28  ;;  %p2454_p1 = scmp.lt.u32.totalorder %s2450_s28, %s3886_s1 }
   0x5   :  { %p2456_p2 = pnand %p2454_p1, %p2451_p0 }
   0x7   :  { %2459 = shalt.err (!%p2456_p2)
}
   0x8   :  { %s2460_s9 = scalar_lea.vmem %s21_s22, 32768  ;;  %p2465_p4 = scmp.lt.s32.totalorder %s21_s22, %s21_s22 }
   0x9   :  { %p2461_p3 = scmp.ne.s32.totalorder %s21_s22, %s2460_s9  ;;  %p2466_p5 = scmp.lt.s32.totalorder %s2460_s9, %s2460_s9 }
   0xb   :  { %p2467_p6 = por %p2466_p5, %p2465_p4 }
   0xd   :  { %p2468_p7 = pnand %p2467_p6, %p2461_p3 }
   0xf   :  { %2471 = shalt.err (!%p2468_p7)
}
  0x10   :  { %s2489_s3 = smov 512   ;;  %s2490_s10 = smov 32  }
  0x11   :  { %26 = dma.hbm_to_vmem [thread:$0]  %s3886_s1, 32768, %s21_s22, [#allocation3], %s2489_s3, %s2489_s3, %s2490_s10  }
  0x12   :  { %s2472_s13 = scalar_lea.vmem %s36_s25, 64  ;;  %p2477_p9 = scmp.lt.s32.totalorder %s36_s25, %s36_s25 }
  0x13   :  { %p2473_p8 = scmp.ne.s32.totalorder %s36_s25, %s2472_s13  ;;  %p2478_p10 = scmp.lt.s32.totalorder %s2472_s13, %s2472_s13 }
  0x15   :  { %p2479_p11 = por %p2478_p10, %p2477_p9 }
  0x17   :  { %p2480_p12 = pnand %p2479_p11, %p2473_p8 }
  0x19   :  { %2483 = shalt.err (!%p2480_p12)
}
  0x1a   :  { %s2491_s14 = smov [#allocation5]  }
  0x1b   :  { %38 = dma.vmem_to_smem %s36_s25, 64, %s2491_s14, [#allocation4]  }
  0x1c   :  { %2484 = dma.done.wait [#allocation3], 32768  }
  0x1d   :  { %2485 = vsyncadd [#allocation3], 4294934528 }
  0x1e   :  { %2486 = dma.done.wait [#allocation4], 64  }
  0x1f   :  { %2487 = vsyncadd [#allocation4], 4294967232 }
  0x20   :  { %49 = sfence }
  0x21   :  { %v55_v0 = vld [vmem:[#allocation2 + $0x8] sm:$0xff]  ;;  %v57_v2 = vld [vmem:[#allocation2 + $0x18] sm:$0xff]  ;;  %v54_v5 = vld [vmem:[#allocation2] sm:$0xff]  ;;  %s1918_s22 = sld [smem:[#allocation5 + $0x81]]  ;;  %s2572_s23 = sld [smem:[#allocation5 + $0x82]]  ;;  %vm635_vm0 = vcmask 1039360  }
  0x22   :  { %v59_v1 = vld [vmem:[#allocation2 + $0x28] sm:$0xff]  ;;  %v61_v4 = vld [vmem:[#allocation2 + $0x38] sm:$0xff]  ;;  %v58_v6 = vld [vmem:[#allocation2 + $0x20] sm:$0xff]  ;;  %s2574_s24 = sld [smem:[#allocation5 + $0x1]]  ;;  %s2576_s25 = sld [smem:[#allocation5 + $0x83]]  ;;  %vm658_vm1 = vcmask 1031168  }
  0x23   :  { %v2020_v3 = vpack.c.bf16 %v59_v1, %v55_v0  ;;  %v2148_v7 = vpack.c.bf16 %v61_v4, %v57_v2  ;;  %v2022_v8 = vpack.c.bf16 %v58_v6, %v54_v5  ;;  %v56_v9 = vld [vmem:[#allocation2 + $0x10] sm:$0xff]  ;;  %v63_v11 = vld [vmem:[#allocation2 + $0x48] sm:$0xff]  ;;  %v65_v14 = vld [vmem:[#allocation2 + $0x58] sm:$0xff]  ;;  %s2578_s26 = sld [smem:[#allocation5 + $0x2]]  ;;  %s2580_s27 = sld [smem:[#allocation5 + $0x84]]  ;;  %vm685_vm2 = vcmask 523264  }
  0x24   :  { %v60_v10 = vld [vmem:[#allocation2 + $0x30] sm:$0xff]  ;;  %v67_v13 = vld [vmem:[#allocation2 + $0x68] sm:$0xff]  ;;  %v69_v15 = vld [vmem:[#allocation2 + $0x78] sm:$0xff]  ;;  %s2585_s29 = sld [smem:[#allocation5 + $0x3]]  ;;  %s2587_s30 = sld [smem:[#allocation5 + $0x85]]  ;;  %vm713_vm3 = vcmask 515072  }
  0x25   :  { %2021 = vmatprep.subr.bf16.mxu0 %v2020_v3  ;;  %v2150_v12 = vpack.c.bf16 %v60_v10, %v56_v9  ;;  %2149 = vmatprep.subr.bf16.mxu1 %v2148_v7  ;;  %v2024_v16 = vpack.c.bf16 %v67_v13, %v63_v11  ;;  %v2152_v17 = vpack.c.bf16 %v69_v15, %v65_v14  ;;  %v62_v18 = vld [vmem:[#allocation2 + $0x40] sm:$0xff]  ;;  %v64_v20 = vld [vmem:[#allocation2 + $0x50] sm:$0xff]  ;;  %v71_v23 = vld [vmem:[#allocation2 + $0x88] sm:$0xff]  ;;  %s2589_s7 = sld [smem:[#allocation5 + $0x4]]  ;;  %s2591_s8 = sld [smem:[#allocation5 + $0x88]]  ;;  %vm741_vm4 = vcmask 506880  }
  0x26   :  { %2023 = vmatpush1.bf16.msra.mxu0 %v2022_v8  ;;  %v66_v19 = vld [vmem:[#allocation2 + $0x60] sm:$0xff]  ;;  %v68_v22 = vld [vmem:[#allocation2 + $0x70] sm:$0xff]  ;;  %v75_v24 = vld [vmem:[#allocation2 + $0xa8] sm:$0xff]  ;;  %s2593_s9 = sld [smem:[#allocation5 + $0x5]]  ;;  %s2595_s3 = sld [smem:[#allocation5 + $0x8]]  ;;  %vm1678_vm5 = vcmask 1043456  }
  0x27   :  { %2151 = vmatpush1.bf16.msra.mxu1 %v2150_v12  ;;  %v2026_v21 = vpack.c.bf16 %v66_v19, %v62_v18  ;;  %2025 = vmatprep.subr.bf16.mxu0 %v2024_v16  ;;  %v2154_v25 = vpack.c.bf16 %v68_v22, %v64_v20  ;;  %v2028_v26 = vpack.c.bf16 %v75_v24, %v71_v23  ;;  %v73_v27 = vld [vmem:[#allocation2 + $0x98] sm:$0xff]  ;;  %v70_v29 = vld [vmem:[#allocation2 + $0x80] sm:$0xff]  ;;  %v72_v32 = vld [vmem:[#allocation2 + $0x90] sm:$0xff]  ;;  %s2597_s10 = sld [smem:[#allocation5 + $0x87]]  ;;  %s2599_s11 = sld [smem:[#allocation5 + $0x101]]  ;;  %vm2505_vm6 = vmmov 1  }
  0x28   :  { %2153 = vmatprep.subr.bf16.mxu1 %v2152_v17  ;;  %v77_v28 = vld [vmem:[#allocation2 + $0xb8] sm:$0xff]  ;;  %v74_v31 = vld [vmem:[#allocation2 + $0xa0] sm:$0xff]  ;;  %v76_v33 = vld [vmem:[#allocation2 + $0xb0] sm:$0xff]  ;;  %s2601_s12 = sld [smem:[#allocation5 + $0x7]]  ;;  %s2605_s13 = sld [smem:[#allocation5 + $0x103]]  ;;  %vm1557_vm8 = vcmask 449536  }
  0x29   :  { %v2156_v30 = vpack.c.bf16 %v77_v28, %v73_v27  ;;  %v2030_v34 = vpack.c.bf16 %v74_v31, %v70_v29  ;;  %v79_v35 = vld [vmem:[#allocation2 + $0xc8] sm:$0xff]  ;;  %v81_v37 = vld [vmem:[#allocation2 + $0xd8] sm:$0xff]  ;;  %v2158_v38 = vpack.c.bf16 %v76_v33, %v72_v32  ;;  %v78_v41 = vld [vmem:[#allocation2 + $0xc0] sm:$0xff]  ;;  %s2609_s14 = sld [smem:[#allocation5 + $0x105]]  ;;  %s2611_s1 = sld [smem:[#allocation5 + $0x104]]  ;;  %vm1553_vm9 = vcmask 498688  }
  0x2a   :  { %2027 = vmatpush1.bf16.msra.mxu0 %v2026_v21  ;;  %v83_v36 = vld [vmem:[#allocation2 + $0xe8] sm:$0xff]  ;;  %v85_v40 = vld [vmem:[#allocation2 + $0xf8] sm:$0xff]  ;;  %v82_v42 = vld [vmem:[#allocation2 + $0xe0] sm:$0xff]  ;;  %s2615_s15 = sld [smem:[#allocation5 + $0x182]]  ;;  %s2617_s16 = sld [smem:[#allocation5 + $0x181]]  ;;  %vm1559_vm10 = vcmask 949248  }
  0x2b   :  { %2155 = vmatpush1.bf16.msra.mxu1 %v2154_v25  ;;  %2029 = vmatprep.subr.bf16.mxu0 %v2028_v26  ;;  %v2032_v39 = vpack.c.bf16 %v83_v36, %v79_v35  ;;  %v2160_v43 = vpack.c.bf16 %v85_v40, %v81_v37  ;;  %v80_v44 = vld [vmem:[#allocation2 + $0xd0] sm:$0xff]  ;;  %v87_v46 = vld [vmem:[#allocation2 + $0x108] sm:$0xff]  ;;  %v89_v48 = vld [vmem:[#allocation2 + $0x118] sm:$0xff]  ;;  %v2034_v50 = vpack.c.bf16 %v82_v42, %v78_v41  ;;  %s2621_s17 = sld [smem:[#allocation5 + $0x107]]  ;;  %s2623_s18 = sld [smem:[#allocation5 + $0x183]]  ;;  %vm1555_vm11 = vcmask 998400  }
  0x2c   :  { %2157 = vmatprep.subr.bf16.mxu1 %v2156_v30  ;;  %v84_v45 = vld [vmem:[#allocation2 + $0xf0] sm:$0xff]  ;;  %v91_v47 = vld [vmem:[#allocation2 + $0x128] sm:$0xff]  ;;  %v93_v49 = vld [vmem:[#allocation2 + $0x138] sm:$0xff]  ;;  %s2627_s19 = sld [smem:[#allocation5 + $0x184]]  ;;  %s2629_s20 = sld [smem:[#allocation5 + $0x108]]  ;;  %vm1565_vm12 = vcmask 351232  }
  0x2d   :  { %v2162_v51 = vpack.c.bf16 %v84_v45, %v80_v44  ;;  %v2036_v52 = vpack.c.bf16 %v91_v47, %v87_v46  ;;  %v86_v53 = vld [vmem:[#allocation2 + $0x100] sm:$0xff]  ;;  %v88_v55 = vld [vmem:[#allocation2 + $0x110] sm:$0xff]  ;;  %v2164_v56 = vpack.c.bf16 %v93_v49, %v89_v48  ;;  %v95_v58 = vld [vmem:[#allocation2 + $0x148] sm:$0xff]  ;;  %s2638_s21 = sld [smem:[#allocation5 + $0x187]]  ;;  %s2492_s28 = smov 127   ;;  %vm1567_vm13 = vcmask 850944  }
  0x2e   :  { %2031 = vmatpush1.bf16.msra.mxu0 %v2030_v34  ;;  %v90_v54 = vld [vmem:[#allocation2 + $0x120] sm:$0xff]  ;;  %v92_v57 = vld [vmem:[#allocation2 + $0x130] sm:$0xff]  ;;  %v99_v59 = vld [vmem:[#allocation2 + $0x168] sm:$0xff]  ;;  %vm1561_vm14 = vcmask 400384   ;;  %vm1563_vm15 = vcmask 900096  }
  0x2f   :  { %2159 = vmatpush1.bf16.msra.mxu1 %v2158_v38  ;;  %2033 = vmatprep.subr.bf16.mxu0 %v2032_v39  ;;  %v97_v60 = vld [vmem:[#allocation2 + $0x158] sm:$0xff]  ;;  %v2038_v62 = vpack.c.bf16 %v90_v54, %v86_v53  ;;  %v2166_v63 = vpack.c.bf16 %v92_v57, %v88_v55  ;;  %v2040_v0 = vpack.c.bf16 %v99_v59, %v95_v58  ;;  %v94_v1 = vld [vmem:[#allocation2 + $0x140] sm:$0xff]  ;;  %v96_v3 = vld [vmem:[#allocation2 + $0x150] sm:$0xff] }
  0x30   :  { %2161 = vmatprep.subr.bf16.mxu1 %v2160_v43  ;;  %v101_v61 = vld [vmem:[#allocation2 + $0x178] sm:$0xff]  ;;  %v98_v2 = vld [vmem:[#allocation2 + $0x160] sm:$0xff]  ;;  %v100_v5 = vld [vmem:[#allocation2 + $0x170] sm:$0xff] }
  0x31   :  { %v2168_v4 = vpack.c.bf16 %v101_v61, %v97_v60  ;;  %v103_v6 = vld [vmem:[#allocation2 + $0x188] sm:$0xff]  ;;  %v105_v8 = vld [vmem:[#allocation2 + $0x198] sm:$0xff]  ;;  %v2042_v10 = vpack.c.bf16 %v98_v2, %v94_v1  ;;  %v2170_v11 = vpack.c.bf16 %v100_v5, %v96_v3  ;;  %v102_v13 = vld [vmem:[#allocation2 + $0x180] sm:$0xff] }
  0x32   :  { %2035 = vmatpush1.bf16.msra.mxu0 %v2034_v50  ;;  %v107_v7 = vld [vmem:[#allocation2 + $0x1a8] sm:$0xff]  ;;  %v109_v9 = vld [vmem:[#allocation2 + $0x1b8] sm:$0xff]  ;;  %v106_v14 = vld [vmem:[#allocation2 + $0x1a0] sm:$0xff] }
  0x33   :  { %2163 = vmatpush1.bf16.msra.mxu1 %v2162_v51  ;;  %2037 = vmatprep.subr.bf16.mxu0 %v2036_v52  ;;  %v2044_v12 = vpack.c.bf16 %v107_v7, %v103_v6  ;;  %v104_v15 = vld [vmem:[#allocation2 + $0x190] sm:$0xff]  ;;  %v2172_v16 = vpack.c.bf16 %v109_v9, %v105_v8  ;;  %v111_v18 = vld [vmem:[#allocation2 + $0x1c8] sm:$0xff]  ;;  %v113_v20 = vld [vmem:[#allocation2 + $0x1d8] sm:$0xff]  ;;  %v2046_v22 = vpack.c.bf16 %v106_v14, %v102_v13 }
  0x34   :  { %2165 = vmatprep.subr.bf16.mxu1 %v2164_v56  ;;  %v108_v17 = vld [vmem:[#allocation2 + $0x1b0] sm:$0xff]  ;;  %v115_v19 = vld [vmem:[#allocation2 + $0x1e8] sm:$0xff]  ;;  %v117_v21 = vld [vmem:[#allocation2 + $0x1f8] sm:$0xff] }
  0x35   :  { %v2174_v23 = vpack.c.bf16 %v108_v17, %v104_v15  ;;  %v2048_v24 = vpack.c.bf16 %v115_v19, %v111_v18  ;;  %v110_v25 = vld [vmem:[#allocation2 + $0x1c0] sm:$0xff]  ;;  %v112_v27 = vld [vmem:[#allocation2 + $0x1d0] sm:$0xff]  ;;  %v2176_v28 = vpack.c.bf16 %v117_v21, %v113_v20  ;;  %v119_v30 = vld [vmem:[#allocation2 + $0x208] sm:$0xff] }
  0x36   :  { %2039 = vmatpush1.bf16.msra.mxu0 %v2038_v62  ;;  %v114_v26 = vld [vmem:[#allocation2 + $0x1e0] sm:$0xff]  ;;  %v116_v29 = vld [vmem:[#allocation2 + $0x1f0] sm:$0xff]  ;;  %v123_v31 = vld [vmem:[#allocation2 + $0x228] sm:$0xff] }
  0x37   :  { %2167 = vmatpush1.bf16.msra.mxu1 %v2166_v63  ;;  %2041 = vmatprep.subr.bf16.mxu0 %v2040_v0  ;;  %v121_v32 = vld [vmem:[#allocation2 + $0x218] sm:$0xff]  ;;  %v2050_v34 = vpack.c.bf16 %v114_v26, %v110_v25  ;;  %v2178_v35 = vpack.c.bf16 %v116_v29, %v112_v27  ;;  %v2052_v36 = vpack.c.bf16 %v123_v31, %v119_v30  ;;  %v118_v37 = vld [vmem:[#allocation2 + $0x200] sm:$0xff]  ;;  %v120_v39 = vld [vmem:[#allocation2 + $0x210] sm:$0xff] }
  0x38   :  { %2169 = vmatprep.subr.bf16.mxu1 %v2168_v4  ;;  %v125_v33 = vld [vmem:[#allocation2 + $0x238] sm:$0xff]  ;;  %v122_v38 = vld [vmem:[#allocation2 + $0x220] sm:$0xff]  ;;  %v124_v41 = vld [vmem:[#allocation2 + $0x230] sm:$0xff] }
  0x39   :  { %v2180_v40 = vpack.c.bf16 %v125_v33, %v121_v32  ;;  %v127_v42 = vld [vmem:[#allocation2 + $0x248] sm:$0xff]  ;;  %v129_v44 = vld [vmem:[#allocation2 + $0x258] sm:$0xff]  ;;  %v2054_v46 = vpack.c.bf16 %v122_v38, %v118_v37  ;;  %v2182_v47 = vpack.c.bf16 %v124_v41, %v120_v39  ;;  %v126_v49 = vld [vmem:[#allocation2 + $0x240] sm:$0xff] }
  0x3a   :  { %2043 = vmatpush1.bf16.msra.mxu0 %v2042_v10  ;;  %v131_v43 = vld [vmem:[#allocation2 + $0x268] sm:$0xff]  ;;  %v133_v45 = vld [vmem:[#allocation2 + $0x278] sm:$0xff]  ;;  %v130_v50 = vld [vmem:[#allocation2 + $0x260] sm:$0xff] }
  0x3b   :  { %2171 = vmatpush1.bf16.msra.mxu1 %v2170_v11  ;;  %2045 = vmatprep.subr.bf16.mxu0 %v2044_v12  ;;  %v2056_v48 = vpack.c.bf16 %v131_v43, %v127_v42  ;;  %v128_v51 = vld [vmem:[#allocation2 + $0x250] sm:$0xff]  ;;  %v2184_v52 = vpack.c.bf16 %v133_v45, %v129_v44  ;;  %v135_v54 = vld [vmem:[#allocation2 + $0x288] sm:$0xff]  ;;  %v137_v56 = vld [vmem:[#allocation2 + $0x298] sm:$0xff]  ;;  %v2058_v58 = vpack.c.bf16 %v130_v50, %v126_v49 }
  0x3c   :  { %2173 = vmatprep.subr.bf16.mxu1 %v2172_v16  ;;  %v132_v53 = vld [vmem:[#allocation2 + $0x270] sm:$0xff]  ;;  %v139_v55 = vld [vmem:[#allocation2 + $0x2a8] sm:$0xff]  ;;  %v141_v57 = vld [vmem:[#allocation2 + $0x2b8] sm:$0xff] }
  0x3d   :  { %v2186_v59 = vpack.c.bf16 %v132_v53, %v128_v51  ;;  %v2060_v60 = vpack.c.bf16 %v139_v55, %v135_v54  ;;  %v134_v61 = vld [vmem:[#allocation2 + $0x280] sm:$0xff]  ;;  %v136_v63 = vld [vmem:[#allocation2 + $0x290] sm:$0xff]  ;;  %v2188_v0 = vpack.c.bf16 %v141_v57, %v137_v56  ;;  %v143_v2 = vld [vmem:[#allocation2 + $0x2c8] sm:$0xff] }
  0x3e   :  { %2047 = vmatpush1.bf16.msra.mxu0 %v2046_v22  ;;  %v138_v62 = vld [vmem:[#allocation2 + $0x2a0] sm:$0xff]  ;;  %v140_v1 = vld [vmem:[#allocation2 + $0x2b0] sm:$0xff]  ;;  %v147_v3 = vld [vmem:[#allocation2 + $0x2e8] sm:$0xff] }
  0x3f   :  { %2175 = vmatpush1.bf16.msra.mxu1 %v2174_v23  ;;  %2049 = vmatprep.subr.bf16.mxu0 %v2048_v24  ;;  %v145_v4 = vld [vmem:[#allocation2 + $0x2d8] sm:$0xff]  ;;  %v2062_v6 = vpack.c.bf16 %v138_v62, %v134_v61  ;;  %v142_v7 = vld [vmem:[#allocation2 + $0x2c0] sm:$0xff]  ;;  %v2190_v8 = vpack.c.bf16 %v140_v1, %v136_v63  ;;  %v2064_v9 = vpack.c.bf16 %v147_v3, %v143_v2  ;;  %v144_v11 = vld [vmem:[#allocation2 + $0x2d0] sm:$0xff] }
  0x40   :  { %2177 = vmatprep.subr.bf16.mxu1 %v2176_v28  ;;  %v149_v5 = vld [vmem:[#allocation2 + $0x2f8] sm:$0xff]  ;;  %v146_v10 = vld [vmem:[#allocation2 + $0x2e0] sm:$0xff]  ;;  %v148_v12 = vld [vmem:[#allocation2 + $0x2f0] sm:$0xff] }
  0x41   :  { %v2192_v13 = vpack.c.bf16 %v149_v5, %v145_v4  ;;  %v151_v14 = vld [vmem:[#allocation2 + $0x308] sm:$0xff]  ;;  %v153_v17 = vld [vmem:[#allocation2 + $0x318] sm:$0xff]  ;;  %v2066_v19 = vpack.c.bf16 %v146_v10, %v142_v7  ;;  %v2194_v20 = vpack.c.bf16 %v148_v12, %v144_v11  ;;  %v150_v22 = vld [vmem:[#allocation2 + $0x300] sm:$0xff] }
  0x42   :  { %2051 = vmatpush1.bf16.msra.mxu0 %v2050_v34  ;;  %v155_v15 = vld [vmem:[#allocation2 + $0x328] sm:$0xff]  ;;  %v157_v18 = vld [vmem:[#allocation2 + $0x338] sm:$0xff]  ;;  %v154_v23 = vld [vmem:[#allocation2 + $0x320] sm:$0xff] }
  0x43   :  { %2179 = vmatpush1.bf16.msra.mxu1 %v2178_v35  ;;  %2053 = vmatprep.subr.bf16.mxu0 %v2052_v36  ;;  %v51_v16 = vld [vmem:[%s3885_s0 + $0x8] sm:$0xff]  ;;  %v2068_v21 = vpack.c.bf16 %v155_v15, %v151_v14  ;;  %v152_v24 = vld [vmem:[#allocation2 + $0x310] sm:$0xff]  ;;  %v2196_v25 = vpack.c.bf16 %v157_v18, %v153_v17  ;;  %v161_v29 = vld [vmem:[#allocation2 + $0x358] sm:$0xff]  ;;  %v2070_v31 = vpack.c.bf16 %v154_v23, %v150_v22 }
  0x44   :  { %2181 = vmatprep.subr.bf16.mxu1 %v2180_v40  ;;  %396 = vmatprep.mubr.f32.mxu0 %v51_v16  ;;  %v156_v26 = vld [vmem:[#allocation2 + $0x330] sm:$0xff]  ;;  %v159_v27 = vld [vmem:[#allocation2 + $0x348] sm:$0xff]  ;;  %v165_v30 = vld [vmem:[#allocation2 + $0x378] sm:$0xff] }
  0x45   :  { %538 = vmatprep.mubr.f32.mxu1 %v51_v16  ;;  %v163_v28 = vld [vmem:[#allocation2 + $0x368] sm:$0xff]  ;;  %v2198_v32 = vpack.c.bf16 %v156_v26, %v152_v24  ;;  %v158_v34 = vld [vmem:[#allocation2 + $0x340] sm:$0xff]  ;;  %v160_v36 = vld [vmem:[#allocation2 + $0x350] sm:$0xff]  ;;  %v2200_v37 = vpack.c.bf16 %v165_v30, %v161_v29 }
  0x46   :  { %2055 = vmatpush1.bf16.msra.mxu0 %v2054_v46  ;;  %v2072_v33 = vpack.c.bf16 %v163_v28, %v159_v27  ;;  %v162_v35 = vld [vmem:[#allocation2 + $0x360] sm:$0xff]  ;;  %v164_v38 = vld [vmem:[#allocation2 + $0x370] sm:$0xff]  ;;  %v167_v39 = vld [vmem:[#allocation2 + $0x388] sm:$0xff] }
  0x47   :  { %2183 = vmatpush1.bf16.msra.mxu1 %v2182_v47  ;;  %2057 = vmatprep.subr.bf16.mxu0 %v2056_v48  ;;  %v171_v40 = vld [vmem:[#allocation2 + $0x3a8] sm:$0xff]  ;;  %v169_v41 = vld [vmem:[#allocation2 + $0x398] sm:$0xff]  ;;  %v2074_v43 = vpack.c.bf16 %v162_v35, %v158_v34  ;;  %v2202_v44 = vpack.c.bf16 %v164_v38, %v160_v36  ;;  %v166_v46 = vld [vmem:[#allocation2 + $0x380] sm:$0xff] }
  0x48   :  { %2185 = vmatprep.subr.bf16.mxu1 %v2184_v52  ;;  %v173_v42 = vld [vmem:[#allocation2 + $0x3b8] sm:$0xff]  ;;  %v2076_v45 = vpack.c.bf16 %v171_v40, %v167_v39  ;;  %v170_v47 = vld [vmem:[#allocation2 + $0x3a0] sm:$0xff]  ;;  %v168_v48 = vld [vmem:[#allocation2 + $0x390] sm:$0xff] }
  0x49   :  { %v2204_v49 = vpack.c.bf16 %v173_v42, %v169_v41  ;;  %v172_v50 = vld [vmem:[#allocation2 + $0x3b0] sm:$0xff]  ;;  %v175_v51 = vld [vmem:[#allocation2 + $0x3c8] sm:$0xff]  ;;  %v177_v53 = vld [vmem:[#allocation2 + $0x3d8] sm:$0xff]  ;;  %v2078_v55 = vpack.c.bf16 %v170_v47, %v166_v46 }
  0x4a   :  { %2059 = vmatpush1.bf16.msra.mxu0 %v2058_v58  ;;  %v179_v52 = vld [vmem:[#allocation2 + $0x3e8] sm:$0xff]  ;;  %v181_v54 = vld [vmem:[#allocation2 + $0x3f8] sm:$0xff]  ;;  %v2206_v56 = vpack.c.bf16 %v172_v50, %v168_v48  ;;  %v174_v58 = vld [vmem:[#allocation2 + $0x3c0] sm:$0xff] }
  0x4b   :  { %2187 = vmatpush1.bf16.msra.mxu1 %v2186_v59  ;;  %2061 = vmatprep.subr.bf16.mxu0 %v2060_v60  ;;  %v2080_v57 = vpack.c.bf16 %v179_v52, %v175_v51  ;;  %v178_v59 = vld [vmem:[#allocation2 + $0x3e0] sm:$0xff]  ;;  %v176_v60 = vld [vmem:[#allocation2 + $0x3d0] sm:$0xff]  ;;  %v2208_v61 = vpack.c.bf16 %v181_v54, %v177_v53  ;;  %v183_v63 = vld [vmem:[#allocation2 + $0x408] sm:$0xff] }
  0x4c   :  { %2189 = vmatprep.subr.bf16.mxu1 %v2188_v0  ;;  %v180_v62 = vld [vmem:[#allocation2 + $0x3f0] sm:$0xff]  ;;  %v187_v0 = vld [vmem:[#allocation2 + $0x428] sm:$0xff]  ;;  %v185_v1 = vld [vmem:[#allocation2 + $0x418] sm:$0xff]  ;;  %v2082_v3 = vpack.c.bf16 %v178_v59, %v174_v58 }
  0x4d   :  { %v189_v2 = vld [vmem:[#allocation2 + $0x438] sm:$0xff]  ;;  %v2210_v4 = vpack.c.bf16 %v180_v62, %v176_v60  ;;  %v2084_v5 = vpack.c.bf16 %v187_v0, %v183_v63  ;;  %v186_v7 = vld [vmem:[#allocation2 + $0x420] sm:$0xff]  ;;  %v188_v10 = vld [vmem:[#allocation2 + $0x430] sm:$0xff] }
  0x4e   :  { %2063 = vmatpush1.bf16.msra.mxu0 %v2062_v6  ;;  %v182_v6 = vld [vmem:[#allocation2 + $0x400] sm:$0xff]  ;;  %v191_v11 = vld [vmem:[#allocation2 + $0x448] sm:$0xff]  ;;  %v197_v14 = vld [vmem:[#allocation2 + $0x478] sm:$0xff] }
  0x4f   :  { %2191 = vmatpush1.bf16.msra.mxu1 %v2190_v8  ;;  %2065 = vmatprep.subr.bf16.mxu0 %v2064_v9  ;;  %v184_v8 = vld [vmem:[#allocation2 + $0x410] sm:$0xff]  ;;  %v2212_v9 = vpack.c.bf16 %v189_v2, %v185_v1  ;;  %v195_v12 = vld [vmem:[#allocation2 + $0x468] sm:$0xff]  ;;  %v50_v15 = vld [vmem:[%s3885_s0] sm:$0xff]  ;;  %v2086_v16 = vpack.c.bf16 %v186_v7, %v182_v6 }
  0x50   :  { %2193 = vmatprep.subr.bf16.mxu1 %v2192_v13  ;;  %v193_v13 = vld [vmem:[#allocation2 + $0x458] sm:$0xff]  ;;  %v2214_v17 = vpack.c.bf16 %v188_v10, %v184_v8  ;;  %v2088_v18 = vpack.c.bf16 %v195_v12, %v191_v11  ;;  %v196_v23 = vld [vmem:[#allocation2 + $0x470] sm:$0xff]  ;;  %v199_v24 = vld [vmem:[#allocation2 + $0x488] sm:$0xff] }
  0x51   :  { %v2216_v22 = vpack.c.bf16 %v197_v14, %v193_v13  ;;  %v201_v26 = vld [vmem:[#allocation2 + $0x498] sm:$0xff]  ;;  %v204_v35 = vld [vmem:[#allocation2 + $0x4b0] sm:$0xff]  ;;  %v207_v36 = vld [vmem:[#allocation2 + $0x4c8] sm:$0xff] }
  0x52   :  { %2067 = vmatpush1.bf16.msra.mxu0 %v2066_v19  ;;  %v190_v19 = vld [vmem:[#allocation2 + $0x440] sm:$0xff]  ;;  %v205_v27 = vld [vmem:[#allocation2 + $0x4b8] sm:$0xff]  ;;  %v212_v47 = vld [vmem:[#allocation2 + $0x4f0] sm:$0xff] }
  0x53   :  { %2195 = vmatpush1.bf16.msra.mxu1 %v2194_v20  ;;  %2069 = vmatprep.subr.bf16.mxu0 %v2068_v21  ;;  %v194_v20 = vld [vmem:[#allocation2 + $0x460] sm:$0xff]  ;;  %v192_v21 = vld [vmem:[#allocation2 + $0x450] sm:$0xff]  ;;  %v2220_v34 = vpack.c.bf16 %v205_v27, %v201_v26  ;;  %v209_v38 = vld [vmem:[#allocation2 + $0x4d8] sm:$0xff] }
  0x54   :  { %2197 = vmatprep.subr.bf16.mxu1 %v2196_v25  ;;  %v203_v25 = vld [vmem:[#allocation2 + $0x4a8] sm:$0xff]  ;;  %v2090_v28 = vpack.c.bf16 %v194_v20, %v190_v19  ;;  %v2218_v29 = vpack.c.bf16 %v196_v23, %v192_v21  ;;  %v213_v39 = vld [vmem:[#allocation2 + $0x4f8] sm:$0xff]  ;;  %v220_v59 = vld [vmem:[#allocation2 + $0x530] sm:$0xff] }
  0x55   :  { %v2092_v30 = vpack.c.bf16 %v203_v25, %v199_v24  ;;  %v2224_v46 = vpack.c.bf16 %v213_v39, %v209_v38  ;;  %v215_v48 = vld [vmem:[#allocation2 + $0x508] sm:$0xff]  ;;  %v217_v50 = vld [vmem:[#allocation2 + $0x518] sm:$0xff]  ;;  %v228_v7 = vld [vmem:[#allocation2 + $0x570] sm:$0xff] }
  0x56   :  { %2071 = vmatpush1.bf16.msra.mxu0 %v2070_v31  ;;  %v198_v31 = vld [vmem:[#allocation2 + $0x480] sm:$0xff]  ;;  %v221_v51 = vld [vmem:[#allocation2 + $0x538] sm:$0xff]  ;;  %v223_v60 = vld [vmem:[#allocation2 + $0x548] sm:$0xff] }
  0x57   :  { %2199 = vmatpush1.bf16.msra.mxu1 %v2198_v32  ;;  %2073 = vmatprep.subr.bf16.mxu0 %v2072_v33  ;;  %v202_v32 = vld [vmem:[#allocation2 + $0x4a0] sm:$0xff]  ;;  %v200_v33 = vld [vmem:[#allocation2 + $0x490] sm:$0xff]  ;;  %v2228_v58 = vpack.c.bf16 %v221_v51, %v217_v50  ;;  %v225_v62 = vld [vmem:[#allocation2 + $0x558] sm:$0xff] }
  0x58   :  { %2201 = vmatprep.subr.bf16.mxu1 %v2200_v37  ;;  %v211_v37 = vld [vmem:[#allocation2 + $0x4e8] sm:$0xff]  ;;  %v2094_v40 = vpack.c.bf16 %v202_v32, %v198_v31  ;;  %v2222_v41 = vpack.c.bf16 %v204_v35, %v200_v33  ;;  %v229_v63 = vld [vmem:[#allocation2 + $0x578] sm:$0xff]  ;;  %v230_v13 = vld [vmem:[#allocation2 + $0x580] sm:$0xff] }
  0x59   :  { %v2096_v42 = vpack.c.bf16 %v211_v37, %v207_v36  ;;  %v2232_v6 = vpack.c.bf16 %v229_v63, %v225_v62  ;;  %v231_v8 = vld [vmem:[#allocation2 + $0x588] sm:$0xff]  ;;  %v233_v10 = vld [vmem:[#allocation2 + $0x598] sm:$0xff]  ;;  %v244_v32 = vld [vmem:[#allocation2 + $0x5f0] sm:$0xff] }
  0x5a   :  { %2075 = vmatpush1.bf16.msra.mxu0 %v2074_v43  ;;  %v206_v43 = vld [vmem:[#allocation2 + $0x4c0] sm:$0xff]  ;;  %v237_v11 = vld [vmem:[#allocation2 + $0x5b8] sm:$0xff]  ;;  %v239_v20 = vld [vmem:[#allocation2 + $0x5c8] sm:$0xff] }
  0x5b   :  { %2203 = vmatpush1.bf16.msra.mxu1 %v2202_v44  ;;  %2077 = vmatprep.subr.bf16.mxu0 %v2076_v45  ;;  %v210_v44 = vld [vmem:[#allocation2 + $0x4e0] sm:$0xff]  ;;  %v208_v45 = vld [vmem:[#allocation2 + $0x4d0] sm:$0xff]  ;;  %v2236_v19 = vpack.c.bf16 %v237_v11, %v233_v10  ;;  %v243_v21 = vld [vmem:[#allocation2 + $0x5e8] sm:$0xff] }
  0x5c   :  { %2205 = vmatprep.subr.bf16.mxu1 %v2204_v49  ;;  %v219_v49 = vld [vmem:[#allocation2 + $0x528] sm:$0xff]  ;;  %v2098_v52 = vpack.c.bf16 %v210_v44, %v206_v43  ;;  %v2226_v53 = vpack.c.bf16 %v212_v47, %v208_v45  ;;  %v241_v23 = vld [vmem:[#allocation2 + $0x5d8] sm:$0xff]  ;;  %v2112_v27 = vpack.c.bf16 %v243_v21, %v239_v20  ;;  %v252_v44 = vld [vmem:[#allocation2 + $0x630] sm:$0xff] }
  0x5d   :  { %v2100_v54 = vpack.c.bf16 %v219_v49, %v215_v48  ;;  %v245_v24 = vld [vmem:[#allocation2 + $0x5f8] sm:$0xff]  ;;  %v247_v33 = vld [vmem:[#allocation2 + $0x608] sm:$0xff]  ;;  %vm2381_vm7 = vmpackc.low %vm1678_vm5, %vm2505_vm6 }
  0x5e   :  { %2079 = vmatpush1.bf16.msra.mxu0 %v2078_v55  ;;  %v214_v55 = vld [vmem:[#allocation2 + $0x500] sm:$0xff]  ;;  %v2240_v31 = vpack.c.bf16 %v245_v24, %v241_v23  ;;  %v249_v35 = vld [vmem:[#allocation2 + $0x618] sm:$0xff]  ;;  %v255_v45 = vld [vmem:[#allocation2 + $0x648] sm:$0xff] }
  0x5f   :  { %2207 = vmatpush1.bf16.msra.mxu1 %v2206_v56  ;;  %2081 = vmatprep.subr.bf16.mxu0 %v2080_v57  ;;  %v218_v56 = vld [vmem:[#allocation2 + $0x520] sm:$0xff]  ;;  %v216_v57 = vld [vmem:[#allocation2 + $0x510] sm:$0xff]  ;;  %v253_v36 = vld [vmem:[#allocation2 + $0x638] sm:$0xff] }
  0x60   :  { %2209 = vmatprep.subr.bf16.mxu1 %v2208_v61  ;;  %v227_v61 = vld [vmem:[#allocation2 + $0x568] sm:$0xff]  ;;  %v2102_v0 = vpack.c.bf16 %v218_v56, %v214_v55  ;;  %v2230_v1 = vpack.c.bf16 %v220_v59, %v216_v57  ;;  %v2244_v43 = vpack.c.bf16 %v253_v36, %v249_v35  ;;  %v257_v47 = vld [vmem:[#allocation2 + $0x658] sm:$0xff]  ;;  %v260_v56 = vld [vmem:[#allocation2 + $0x670] sm:$0xff] }
  0x61   :  { %v2104_v2 = vpack.c.bf16 %v227_v61, %v223_v60  ;;  %v261_v48 = vld [vmem:[#allocation2 + $0x678] sm:$0xff]  ;;  %v263_v57 = vld [vmem:[#allocation2 + $0x688] sm:$0xff]  ;;  %v278_v24 = vld [vmem:[#allocation2 + $0x700] sm:$0xff] }
  0x62   :  { %2083 = vmatpush1.bf16.msra.mxu0 %v2082_v3  ;;  %v222_v3 = vld [vmem:[#allocation2 + $0x540] sm:$0xff]  ;;  %v2248_v55 = vpack.c.bf16 %v261_v48, %v257_v47  ;;  %v265_v59 = vld [vmem:[#allocation2 + $0x698] sm:$0xff] }
  0x63   :  { %2211 = vmatpush1.bf16.msra.mxu1 %v2210_v4  ;;  %2085 = vmatprep.subr.bf16.mxu0 %v2084_v5  ;;  %v226_v4 = vld [vmem:[#allocation2 + $0x560] sm:$0xff]  ;;  %v224_v5 = vld [vmem:[#allocation2 + $0x550] sm:$0xff]  ;;  %v269_v60 = vld [vmem:[#allocation2 + $0x6b8] sm:$0xff] }
  0x64   :  { %2213 = vmatprep.subr.bf16.mxu1 %v2212_v9  ;;  %v235_v9 = vld [vmem:[#allocation2 + $0x5a8] sm:$0xff]  ;;  %v2106_v12 = vpack.c.bf16 %v226_v4, %v222_v3  ;;  %v2234_v14 = vpack.c.bf16 %v228_v7, %v224_v5  ;;  %v2252_v3 = vpack.c.bf16 %v269_v60, %v265_v59  ;;  %v268_v4 = vld [vmem:[#allocation2 + $0x6b0] sm:$0xff]  ;;  %v273_v7 = vld [vmem:[#allocation2 + $0x6d8] sm:$0xff] }
  0x65   :  { %397 = vmatmul.mubr.f32.vlgmr.msra.gmra.mrb[0].mxu0 %v50_v15  ;;  %v271_v5 = vld [vmem:[#allocation2 + $0x6c8] sm:$0xff]  ;;  %v285_v20 = vld [vmem:[#allocation2 + $0x738] sm:$0xff]  ;;  %v286_v36 = vld [vmem:[#allocation2 + $0x740] sm:$0xff] }
  0x66   :  { %2087 = vmatpush1.bf16.msra.mxu0 %v2086_v16  ;;  %539 = vmatmul.mubr.f32.vlgmr.msra.gmra.mrb[0].mxu1 %v50_v15  ;;  %v2108_v15 = vpack.c.bf16 %v235_v9, %v231_v8  ;;  %v234_v16 = vld [vmem:[#allocation2 + $0x5a0] sm:$0xff]  ;;  %v277_v8 = vld [vmem:[#allocation2 + $0x6f8] sm:$0xff] }
  0x67   :  { %2215 = vmatpush1.bf16.msra.mxu1 %v2214_v17  ;;  %2089 = vmatprep.subr.bf16.mxu0 %v2088_v18  ;;  %v232_v17 = vld [vmem:[#allocation2 + $0x590] sm:$0xff]  ;;  %v2110_v25 = vpack.c.bf16 %v234_v16, %v230_v13  ;;  %v274_v13 = vld [vmem:[#allocation2 + $0x6e0] sm:$0xff] }
  0x68   :  { %2217 = vmatprep.subr.bf16.mxu1 %v2216_v22  ;;  %v236_v18 = vld [vmem:[#allocation2 + $0x5b0] sm:$0xff]  ;;  %v53_v22 = vld [vmem:[%s3885_s0 + $0x18] sm:$0xff]  ;;  %v294_v48 = vld [vmem:[#allocation2 + $0x780] sm:$0xff] }
  0x69   :  { %467 = vmatprep.mubr.f32.mxu0 %v53_v22  ;;  %609 = vmatprep.mubr.f32.mxu1 %v53_v22  ;;  %v2238_v26 = vpack.c.bf16 %v236_v18, %v232_v17  ;;  %v276_v16 = vld [vmem:[#allocation2 + $0x6f0] sm:$0xff]  ;;  %v279_v17 = vld [vmem:[#allocation2 + $0x708] sm:$0xff]  ;;  %v302_v60 = vld [vmem:[#allocation2 + $0x7c0] sm:$0xff] }
  0x6a   :  { %2091 = vmatpush1.bf16.msra.mxu0 %v2090_v28  ;;  %v238_v28 = vld [vmem:[#allocation2 + $0x5c0] sm:$0xff]  ;;  %v283_v18 = vld [vmem:[#allocation2 + $0x728] sm:$0xff] }
  0x6b   :  { %2219 = vmatpush1.bf16.msra.mxu1 %v2218_v29  ;;  %2093 = vmatprep.subr.bf16.mxu0 %v2092_v30  ;;  %v242_v29 = vld [vmem:[#allocation2 + $0x5e0] sm:$0xff]  ;;  %v240_v30 = vld [vmem:[#allocation2 + $0x5d0] sm:$0xff]  ;;  %v2132_v23 = vpack.c.bf16 %v283_v18, %v279_v17 }
  0x6c   :  { %2221 = vmatprep.subr.bf16.mxu1 %v2220_v34  ;;  %v251_v34 = vld [vmem:[#allocation2 + $0x628] sm:$0xff]  ;;  %v2114_v37 = vpack.c.bf16 %v242_v29, %v238_v28  ;;  %v2242_v38 = vpack.c.bf16 %v244_v32, %v240_v30  ;;  %v284_v28 = vld [vmem:[#allocation2 + $0x730] sm:$0xff]  ;;  %v293_v32 = vld [vmem:[#allocation2 + $0x778] sm:$0xff] }
  0x6d   :  { %v2116_v39 = vpack.c.bf16 %v251_v34, %v247_v33  ;;  %v287_v29 = vld [vmem:[#allocation2 + $0x748] sm:$0xff] }
  0x6e   :  { %2095 = vmatpush1.bf16.msra.mxu0 %v2094_v40  ;;  %v246_v40 = vld [vmem:[#allocation2 + $0x600] sm:$0xff]  ;;  %v291_v30 = vld [vmem:[#allocation2 + $0x768] sm:$0xff] }
  0x6f   :  { %2223 = vmatpush1.bf16.msra.mxu1 %v2222_v41  ;;  %2097 = vmatprep.subr.bf16.mxu0 %v2096_v42  ;;  %v250_v41 = vld [vmem:[#allocation2 + $0x620] sm:$0xff]  ;;  %v248_v42 = vld [vmem:[#allocation2 + $0x610] sm:$0xff]  ;;  %v2136_v35 = vpack.c.bf16 %v291_v30, %v287_v29  ;;  %v2652_v30 = vstv %s2587_s30  ;;  %s1923_s30 = sld [smem:[#allocation5 + $0x86]] }
  0x70   :  { %2225 = vmatprep.subr.bf16.mxu1 %v2224_v46  ;;  %v259_v46 = vld [vmem:[#allocation2 + $0x668] sm:$0xff]  ;;  %v2118_v49 = vpack.c.bf16 %v250_v41, %v246_v40  ;;  %v2246_v50 = vpack.c.bf16 %v252_v44, %v248_v42  ;;  %v292_v40 = vld [vmem:[#allocation2 + $0x770] sm:$0xff]  ;;  %v301_v44 = vld [vmem:[#allocation2 + $0x7b8] sm:$0xff] }
  0x71   :  { %v2120_v51 = vpack.c.bf16 %v259_v46, %v255_v45  ;;  %v295_v41 = vld [vmem:[#allocation2 + $0x788] sm:$0xff] }
  0x72   :  { %2099 = vmatpush1.bf16.msra.mxu0 %v2098_v52  ;;  %v254_v52 = vld [vmem:[#allocation2 + $0x640] sm:$0xff]  ;;  %v299_v42 = vld [vmem:[#allocation2 + $0x7a8] sm:$0xff] }
  0x73   :  { %2227 = vmatpush1.bf16.msra.mxu1 %v2226_v53  ;;  %2101 = vmatprep.subr.bf16.mxu0 %v2100_v54  ;;  %v258_v53 = vld [vmem:[#allocation2 + $0x660] sm:$0xff]  ;;  %v256_v54 = vld [vmem:[#allocation2 + $0x650] sm:$0xff]  ;;  %v2140_v47 = vpack.c.bf16 %v299_v42, %v295_v41  ;;  %v2685_v42 = vstv %s2605_s13  ;;  %s1946_s13 = sld [smem:[#allocation5 + $0x189]] }
  0x74   :  { %2229 = vmatprep.subr.bf16.mxu1 %v2228_v58  ;;  %v267_v58 = vld [vmem:[#allocation2 + $0x6a8] sm:$0xff]  ;;  %v2122_v61 = vpack.c.bf16 %v258_v53, %v254_v52  ;;  %v2250_v62 = vpack.c.bf16 %v260_v56, %v256_v54  ;;  %v300_v52 = vld [vmem:[#allocation2 + $0x7b0] sm:$0xff]  ;;  %v309_v56 = vld [vmem:[#allocation2 + $0x7f8] sm:$0xff] }
  0x75   :  { %v2124_v63 = vpack.c.bf16 %v267_v58, %v263_v57  ;;  %v303_v53 = vld [vmem:[#allocation2 + $0x7c8] sm:$0xff] }
  0x76   :  { %2103 = vmatpush1.bf16.msra.mxu0 %v2102_v0  ;;  %v262_v0 = vld [vmem:[#allocation2 + $0x680] sm:$0xff]  ;;  %v307_v54 = vld [vmem:[#allocation2 + $0x7e8] sm:$0xff] }
  0x77   :  { %2231 = vmatpush1.bf16.msra.mxu1 %v2230_v1  ;;  %2105 = vmatprep.subr.bf16.mxu0 %v2104_v2  ;;  %v266_v1 = vld [vmem:[#allocation2 + $0x6a0] sm:$0xff]  ;;  %v264_v2 = vld [vmem:[#allocation2 + $0x690] sm:$0xff]  ;;  %v2144_v59 = vpack.c.bf16 %v307_v54, %v303_v53  ;;  %v2714_v53 = vstv %s2629_s20  ;;  %v2717_v54 = vstv %s2638_s21 }
  0x78   :  { %2233 = vmatprep.subr.bf16.mxu1 %v2232_v6  ;;  %v275_v6 = vld [vmem:[#allocation2 + $0x6e8] sm:$0xff]  ;;  %v2126_v9 = vpack.c.bf16 %v266_v1, %v262_v0  ;;  %v2254_v10 = vpack.c.bf16 %v268_v4, %v264_v2  ;;  %v308_v0 = vld [vmem:[#allocation2 + $0x7f0] sm:$0xff]  ;;  %v312_v4 = vlaneseq }
  0x79   :  { %v2128_v11 = vpack.c.bf16 %v275_v6, %v271_v5 }
  0x7a   :  { %2107 = vmatpush1.bf16.msra.mxu0 %v2106_v12  ;;  %v270_v12 = vld [vmem:[#allocation2 + $0x6c0] sm:$0xff]  ;;  %v313_v5 = vshrl.u32 %v312_v4, 7 }
  0x7b   :  { %2235 = vmatpush1.bf16.msra.mxu1 %v2234_v14  ;;  %2109 = vmatprep.subr.bf16.mxu0 %v2108_v15  ;;  %v272_v14 = vld [vmem:[#allocation2 + $0x6d0] sm:$0xff]  ;;  %v2256_v15 = vpack.c.bf16 %v277_v8, %v273_v7  ;;  %v2130_v21 = vpack.c.bf16 %v274_v13, %v270_v12  ;;  %v310_v8 = vld [vmem:[%s3887_s2] sm:$0xf]  ;;  %s2603_s2 = sld [smem:[#allocation5 + $0x102]]  ;;  %v2607_v13 = vstv %s1918_s22  ;;  %s2640_s22 = sld [smem:[#allocation5 + $0x185]] }
  0x7c   :  { %2237 = vmatprep.subr.bf16.mxu1 %v2236_v19  ;;  %v281_v19 = vld [vmem:[#allocation2 + $0x718] sm:$0xff]  ;;  %v2258_v22 = vpack.c.bf16 %v276_v16, %v272_v14  ;;  %v314_v6 = vsub.s32 0, %v313_v5  ;;  %v322_v7 = vsub.s32 2, %v313_v5  ;;  %v326_v18 = vsub.s32 3, %v313_v5 }
  0x7e   :  { %2111 = vmatpush1.bf16.msra.mxu0 %v2110_v25  ;;  %v282_v25 = vld [vmem:[#allocation2 + $0x720] sm:$0xff]  ;;  %v327_v29 = vrot.slane %v310_v8, %v326_v18 }
  0x7f   :  { %2239 = vmatpush1.bf16.msra.mxu1 %v2238_v26  ;;  %2113 = vmatprep.subr.bf16.mxu0 %v2112_v27  ;;  %v280_v26 = vld [vmem:[#allocation2 + $0x710] sm:$0xff]  ;;  %v2260_v27 = vpack.c.bf16 %v285_v20, %v281_v19  ;;  %v2134_v33 = vpack.c.bf16 %v282_v25, %v278_v24  ;;  %v893_v24 = vstv %s2576_s25  ;;  %s2495_s25 = smov 63  }
  0x80   :  { %2241 = vmatprep.subr.bf16.mxu1 %v2240_v31  ;;  %v289_v31 = vld [vmem:[#allocation2 + $0x758] sm:$0xff]  ;;  %v2262_v34 = vpack.c.bf16 %v284_v28, %v280_v26  ;;  %v2644_v26 = vstv %s2578_s26  ;;  %v2648_v28 = vstv %s2585_s29  ;;  %s2496_s26 = smov 62   ;;  %s616_s29 = sld [smem:[#allocation5]] }
  0x82   :  { %2115 = vmatpush1.bf16.msra.mxu0 %v2114_v37  ;;  %v290_v37 = vld [vmem:[#allocation2 + $0x760] sm:$0xff] }
  0x83   :  { %2243 = vmatpush1.bf16.msra.mxu1 %v2242_v38  ;;  %2117 = vmatprep.subr.bf16.mxu0 %v2116_v39  ;;  %v288_v38 = vld [vmem:[#allocation2 + $0x750] sm:$0xff]  ;;  %v2264_v39 = vpack.c.bf16 %v293_v32, %v289_v31  ;;  %v2138_v45 = vpack.c.bf16 %v290_v37, %v286_v36  ;;  %v2655_v31 = vstv %s2589_s7  ;;  %v2658_v32 = vstv %s2591_s8  ;;  %s3256_s7 = sld [smem:[#allocation5 + $0x6]]  ;;  %s1927_s8 = sld [smem:[#allocation5 + $0x100]] }
  0x84   :  { %2245 = vmatprep.subr.bf16.mxu1 %v2244_v43  ;;  %v297_v43 = vld [vmem:[#allocation2 + $0x798] sm:$0xff]  ;;  %v2266_v46 = vpack.c.bf16 %v292_v40, %v288_v38  ;;  %v2669_v36 = vstv %s2597_s10  ;;  %v2673_v38 = vstv %s2599_s11  ;;  %v2679_v40 = vstv %s2603_s2  ;;  %s1916_s10 = sld [smem:[#allocation5 + $0x9]]  ;;  %s1937_s11 = sld [smem:[#allocation5 + $0x180]] }
  0x85   :  { %s1943_s2 = sld [smem:[#allocation5 + $0x186]] }
  0x86   :  { %2119 = vmatpush1.bf16.msra.mxu0 %v2118_v49  ;;  %v298_v49 = vld [vmem:[#allocation2 + $0x7a0] sm:$0xff] }
  0x87   :  { %2247 = vmatpush1.bf16.msra.mxu1 %v2246_v50  ;;  %2121 = vmatprep.subr.bf16.mxu0 %v2120_v51  ;;  %v296_v50 = vld [vmem:[#allocation2 + $0x790] sm:$0xff]  ;;  %v2268_v51 = vpack.c.bf16 %v301_v44, %v297_v43  ;;  %v2142_v57 = vpack.c.bf16 %v298_v49, %v294_v48  ;;  %v2688_v43 = vstv %s2609_s14  ;;  %v2691_v44 = vstv %s2611_s1 }
  0x88   :  { %2249 = vmatprep.subr.bf16.mxu1 %v2248_v55  ;;  %v305_v55 = vld [vmem:[#allocation2 + $0x7d8] sm:$0xff]  ;;  %v2270_v58 = vpack.c.bf16 %v300_v52, %v296_v50  ;;  %v2707_v50 = vstv %s2623_s18 }
  0x8a   :  { %2123 = vmatpush1.bf16.msra.mxu0 %v2122_v61  ;;  %v306_v61 = vld [vmem:[#allocation2 + $0x7e0] sm:$0xff] }
  0x8b   :  { %2251 = vmatpush1.bf16.msra.mxu1 %v2250_v62  ;;  %2125 = vmatprep.subr.bf16.mxu0 %v2124_v63  ;;  %v2272_v62 = vpack.c.bf16 %v309_v56, %v305_v55  ;;  %v304_v63 = vld [vmem:[#allocation2 + $0x7d0] sm:$0xff]  ;;  %v2146_v1 = vpack.c.bf16 %v306_v61, %v302_v60  ;;  %v2720_v55 = vstv %s2640_s22  ;;  %s2498_s22 = smov 122  }
  0x8c   :  { %2253 = vmatprep.subr.bf16.mxu1 %v2252_v3  ;;  %v2274_v2 = vpack.c.bf16 %v308_v0, %v304_v63  ;;  %v52_v3 = vld [vmem:[%s3885_s0 + $0x10] sm:$0xff]  ;;  %s1917_s0 = sld [smem:[#allocation5 + $0x80]] }
  0x8e   :  { %2127 = vmatpush1.bf16.msra.mxu0 %v2126_v9  ;;  %v315_v9 = vrot.slane %v310_v8, %v314_v6 }
  0x8f   :  { %2255 = vmatpush1.bf16.msra.mxu1 %v2254_v10  ;;  %2129 = vmatprep.subr.bf16.mxu0 %v2128_v11  ;;  %v323_v10 = vrot.slane %v310_v8, %v322_v7  ;;  %v318_v11 = vsub.s32 1, %v313_v5 }
  0x90   :  { %2257 = vmatprep.subr.bf16.mxu1 %v2256_v15 }
  0x91   :  { %v319_v25 = vrot.slane %v310_v8, %v318_v11 }
  0x92   :  { %2131 = vmatpush1.bf16.msra.mxu0 %v2130_v21 }
  0x93   :  { %2259 = vmatpush1.bf16.msra.mxu1 %v2258_v22  ;;  %2133 = vmatprep.subr.bf16.mxu0 %v2132_v23  ;;  %v871_v22 = vstv %s2572_s23  ;;  %v2635_v23 = vstv %s2574_s24  ;;  %s2493_s23 = smov 126   ;;  %s2494_s24 = smov 64  }
  0x94   :  { %2261 = vmatprep.subr.bf16.mxu1 %v2260_v27  ;;  %v920_v27 = vstv %s2580_s27  ;;  %s1945_s27 = sld [smem:[#allocation5 + $0x188]] }
  0x96   :  { %2135 = vmatpush1.bf16.msra.mxu0 %v2134_v33 }
  0x97   :  { %2263 = vmatpush1.bf16.msra.mxu1 %v2262_v34  ;;  %2137 = vmatprep.subr.bf16.mxu0 %v2136_v35  ;;  %v2663_v34 = vstv %s2593_s9  ;;  %v2666_v35 = vstv %s2595_s3  ;;  %s1926_s9 = sld [smem:[#allocation5 + $0x89]]  ;;  %s1933_s3 = sld [smem:[#allocation5 + $0x106]] }
  0x98   :  { %2265 = vmatprep.subr.bf16.mxu1 %v2264_v39  ;;  %v2676_v39 = vstv %s2601_s12  ;;  %s1936_s12 = sld [smem:[#allocation5 + $0x109]] }
  0x9a   :  { %2139 = vmatpush1.bf16.msra.mxu0 %v2138_v45  ;;  %v2695_v45 = vstv %s2615_s15 }
  0x9b   :  { %2267 = vmatpush1.bf16.msra.mxu1 %v2266_v46  ;;  %2141 = vmatprep.subr.bf16.mxu0 %v2140_v47  ;;  %v2698_v46 = vstv %s2617_s16  ;;  %v2701_v47 = vstv %s2621_s17 }
  0x9c   :  { %2269 = vmatprep.subr.bf16.mxu1 %v2268_v51  ;;  %v2710_v51 = vstv %s2627_s19 }
  0x9e   :  { %2143 = vmatpush1.bf16.msra.mxu0 %v2142_v57 }
  0x9f   :  { %2271 = vmatpush1.bf16.msra.mxu1 %v2270_v58  ;;  %2145 = vmatprep.subr.bf16.mxu0 %v2144_v59 }
  0xa0   :  { %2273 = vmatprep.subr.bf16.mxu1 %v2272_v62 }
  0xa2   :  { %2147 = vmatpush1.bf16.msra.mxu0 %v2146_v1 }
  0xa3   :  { %2275 = vmatpush1.bf16.msra.mxu1 %v2274_v2 }
  0xa5   :  { %468 = vmatmul.mubr.f32.vlgmr.msra.gmra.mrb[0].mxu0 %v52_v3 }
  0xa6   :  { %610 = vmatmul.mubr.f32.vlgmr.msra.gmra.mrb[0].mxu1 %v52_v3 }
 0x178   :  { %v469_v12 = vpop.f32.mrb[0].mxu0 }
 0x179   :  { %v2613_v14 = vadd.f32 %v469_v12, %v315_v9  ;;  %v611_v15 = vpop.f32.mrb[0].mxu1  ;;  %v471_v16 = vpop.f32.mrb[1].mxu0 }
 0x17a   :  { %v2619_v17 = vadd.f32 %v611_v15, %v323_v10  ;;  %v613_v19 = vpop.f32.mrb[1].mxu1  ;;  %v2681_v41 = vadd.f32 %v471_v16, %v319_v25 }
 0x17b   :  { %v850_v20 = vmul.f32 %v2613_v14, %v2607_v13  ;;  %v872_v37 = vmul.f32 %v2613_v14, %v871_v22  ;;  %v2703_v48 = vadd.f32 %v613_v19, %v327_v29  ;;  %v894_v49 = vmul.f32 %v2613_v14, %v893_v24 }
 0x17c   :  { %v852_v21 = vmul.f32 %v2619_v17, %v2607_v13  ;;  %v625_v33 = vmul.f32 %v2619_v17, %v2635_v23  ;;  %v874_v52 = vmul.f32 %v2619_v17, %v871_v22  ;;  %v648_v56 = vmul.f32 %v2619_v17, %v2644_v26 }
 0x17d   :  { %856 = vrot.lane.b32.xlu0 %v850_v20, %s2492_s28  ;;  %3899 = vst [vmem:[#allocation8_spill] sm:$0xff] %v2703_v48  ;;  %v896_v57 = vmul.f32 %v2619_v17, %v893_v24  ;;  %v921_v58 = vmul.f32 %v2613_v14, %v920_v27  ;;  %v2729_v59 = vmul.f32 %v2681_v41, %v2607_v13 }
 0x17e   :  { %860 = vrot.lane.b32.xlu1 %v852_v21, %s2492_s28  ;;  %v2733_v60 = vmul.f32 %v2681_v41, %v871_v22  ;;  %v2737_v61 = vmul.f32 %v2681_v41, %v2635_v23  ;;  %v2741_v62 = vmul.f32 %v2681_v41, %v2644_v26  ;;  %v2744_v63 = vmul.f32 %v2681_v41, %v893_v24 }
 0x17f   :  { %v2747_v0 = vmul.f32 %v2703_v48, %v893_v24  ;;  %v2751_v1 = vmul.f32 %v2681_v41, %v2648_v28  ;;  %v2754_v2 = vmul.f32 %v2681_v41, %v920_v27  ;;  %v2758_v3 = vmul.f32 %v2703_v48, %v2648_v28 }
 0x180   :  { %v2762_v4 = vmul.f32 %v2681_v41, %v2655_v31  ;;  %v2765_v5 = vmul.f32 %v2703_v48, %v920_v27  ;;  %v2769_v6 = vmul.f32 %v2703_v48, %v2655_v31  ;;  %v2773_v7 = vmul.f32 %v2681_v41, %v2652_v30 }
 0x181   :  { %633 = vrot.lane.b32.xlu0 %v625_v33, %s2492_s28  ;;  %v671_v8 = vmul.f32 %v2619_v17, %v2648_v28  ;;  %v2780_v9 = vmul.f32 %v2703_v48, %v2652_v30  ;;  %v2784_v10 = vmul.f32 %v2681_v41, %v2663_v34  ;;  %v2788_v11 = vmul.f32 %v2681_v41, %v2658_v32 }
 0x182   :  { %878 = vrot.lane.b32.xlu1 %v872_v37, %s2493_s23  ;;  %v923_v12 = vmul.f32 %v2619_v17, %v920_v27  ;;  %v2794_v13 = vmul.f32 %v2703_v48, %v2663_v34  ;;  %v2798_v15 = vmul.f32 %v2703_v48, %v2658_v32  ;;  %v2802_v16 = vmul.f32 %v2681_v41, %v2669_v36 }
 0x183   :  { %v2806_v18 = vmul.f32 %v2703_v48, %v2666_v35  ;;  %v2810_v19 = vmul.f32 %v2703_v48, %v2669_v36  ;;  %v2814_v20 = vmul.f32 %v2681_v41, %v2673_v38  ;;  %v2818_v21 = vmul.f32 %v2703_v48, %v2676_v39 }
 0x184   :  { %v2822_v22 = vmul.f32 %v2681_v41, %v2685_v42  ;;  %v2826_v24 = vmul.f32 %v2681_v41, %v2679_v40  ;;  %v2830_v25 = vmul.f32 %v2703_v48, %v2685_v42  ;;  %v2834_v27 = vmul.f32 %v2681_v41, %v2688_v43 }
 0x185   :  { %902 = vrot.lane.b32.xlu0 %v894_v49, %s2494_s24  ;;  %v2839_v29 = vmul.f32 %v2681_v41, %v2691_v44  ;;  %v2843_v33 = vmul.f32 %v2703_v48, %v2688_v43  ;;  %v2847_v37 = vmul.f32 %v2703_v48, %v2691_v44  ;;  %v2851_v49 = vmul.f32 %v2681_v41, %v2695_v45 }
 0x186   :  { %882 = vrot.lane.b32.xlu1 %v874_v52, %s2493_s23  ;;  %v2856_v52 = vmul.f32 %v2681_v41, %v2698_v46 }
 0x187   :  { %3900 = vst [vmem:[#allocation9_spill] sm:$0xff] %v2843_v33  ;;  %3901 = vst [vmem:[#allocation10_spill] sm:$0xff] %v2851_v49  ;;  %v948_v49 = vmul.f32 %v2613_v14, %v2652_v30  ;;  %v2894_v33 = vmul.f32 %v2681_v41, %v2717_v54 }
 0x188   :  { %3902 = vst [vmem:[#allocation11_spill] sm:$0xff] %v2856_v52  ;;  %v2878_v52 = vmul.f32 %v2681_v41, %v2710_v51 }
 0x189   :  { %906 = vrot.lane.b32.xlu0 %v896_v57, %s2494_s24  ;;  %v2864_v57 = vmul.f32 %v2681_v41, %v2707_v50  ;;  %3910 = vst [vmem:[#allocation19_spill] sm:$0xff] %v2894_v33  ;;  %v950_v33 = vmul.f32 %v2619_v17, %v2652_v30  ;;  %v2940_v30 = vmul.f32 %v2681_v41, %v2666_v35 }
 0x18a   :  { %656 = vrot.lane.b32.xlu1 %v648_v56, %s2493_s23  ;;  %v2860_v56 = vmul.f32 %v2681_v41, %v2701_v47  ;;  %3907 = vst [vmem:[#allocation16_spill] sm:$0xff] %v2878_v52  ;;  %v2903_v52 = vmul.f32 %v2703_v48, %v2717_v54 }
 0x18b   :  { %3904 = vst [vmem:[#allocation13_spill] sm:$0xff] %v2864_v57  ;;  %v2886_v57 = vmul.f32 %v2703_v48, %v2710_v51  ;;  %3913 = vst [vmem:[#allocation22_spill] sm:$0xff] %v2940_v30  ;;  %v784_v30 = vmul.f32 %v2619_v17, %v2666_v35  ;;  %v1074_v35 = vmul.f32 %v2619_v17, %v2673_v38 }
 0x18c   :  { %3903 = vst [vmem:[#allocation12_spill] sm:$0xff] %v2860_v56  ;;  %v2882_v56 = vmul.f32 %v2681_v41, %v2714_v53  ;;  %3911 = vst [vmem:[#allocation20_spill] sm:$0xff] %v2903_v52  ;;  %v2922_v52 = vmul.f32 %v2613_v14, %v2648_v28  ;;  %v727_v28 = vmul.f32 %v2619_v17, %v2663_v34 }
 0x18d   :  { %681 = vrot.lane.b32.xlu0 %v671_v8, %s2494_s24  ;;  %v2868_v8 = vmul.f32 %v2703_v48, %v2701_v47  ;;  %3908 = vst [vmem:[#allocation17_spill] sm:$0xff] %v2886_v57  ;;  %v2907_v57 = vmul.f32 %v2703_v48, %v2720_v55 }
 0x18e   :  { %929 = vrot.lane.b32.xlu1 %v921_v58, %s2495_s25  ;;  %v2874_v58 = vmul.f32 %v2703_v48, %v2707_v50 }
 0x18f   :  { %3905 = vst [vmem:[#allocation14_spill] sm:$0xff] %v2868_v8  ;;  %v2890_v8 = vmul.f32 %v2703_v48, %v2714_v53  ;;  %v2926_v48 = vmul.f32 %v2613_v14, %v2655_v31 }
 0x190   :  { %3906 = vst [vmem:[#allocation15_spill] sm:$0xff] %v2874_v58  ;;  %v2898_v58 = vmul.f32 %v2681_v41, %v2720_v55 }
 0x191   :  { %3909 = vst [vmem:[#allocation18_spill] sm:$0xff] %v2890_v8  ;;  %956 = vrot.lane.b32.xlu0 %v948_v49, %s2496_s26  ;;  %v2914_v8 = vmul.f32 %v2613_v14, %v2635_v23  ;;  %v2918_v49 = vmul.f32 %v2613_v14, %v2644_v26  ;;  %v2934_v23 = vmul.f32 %v2681_v41, %v2676_v39 }
 0x192   :  { %933 = vrot.lane.b32.xlu1 %v923_v12, %s2495_s25  ;;  %v2930_v12 = vmul.f32 %v2613_v14, %v2663_v34  ;;  %v699_v26 = vmul.f32 %v2619_v17, %v2655_v31  ;;  %v984_v31 = vmul.f32 %v2619_v17, %v2669_v36  ;;  %v762_v34 = vmul.f32 %v2619_v17, %v2676_v39 }
 0x193   :  { %v1094_v36 = vmul.f32 %v2613_v14, %v2679_v40  ;;  %v1096_v39 = vmul.f32 %v2619_v17, %v2679_v40  ;;  %v1172_v40 = vmul.f32 %v2619_v17, %v2688_v43 }
 0x194   :  { %3912 = vst [vmem:[#allocation21_spill] sm:$0xff] %v2930_v12  ;;  %v1006_v12 = vmul.f32 %v2619_v17, %v2658_v32  ;;  %v1072_v32 = vmul.f32 %v2613_v14, %v2673_v38  ;;  %v1118_v38 = vmul.f32 %v2619_v17, %v2685_v42 }
 0x195   :  { %960 = vrot.lane.b32.xlu0 %v950_v33, %s2496_s26  ;;  %v1116_v33 = vmul.f32 %v2613_v14, %v2685_v42  ;;  %v1145_v42 = vmul.f32 %v2619_v17, %v2691_v44 }
 0x196   :  { %709 = vrot.lane.b32.xlu1 %v699_v26, %s2495_s25  ;;  %v1143_v26 = vmul.f32 %v2613_v14, %v2691_v44  ;;  %v1296_v44 = vmul.f32 %v2619_v17, %v2698_v46 }
 0x199   :  { %737 = vrot.lane.b32.xlu0 %v727_v28, %s2496_s26  ;;  %v1294_v28 = vmul.f32 %v2613_v14, %v2698_v46  ;;  %v1340_v46 = vmul.f32 %v2619_v17, %v2707_v50 }
 0x19a   :  { %1013 = vrot.lane.b32.xlu1 %v1006_v12, %s2493_s23  ;;  %v1170_v12 = vmul.f32 %v2613_v14, %v2688_v43  ;;  %v1318_v43 = vmul.f32 %v2619_v17, %v2695_v45 }
 0x19d   :  { %991 = vrot.lane.b32.xlu0 %v984_v31, %s2492_s28  ;;  %v1206_v31 = vmul.f32 %v2619_v17, %v2701_v47  ;;  %v1367_v47 = vmul.f32 %v2619_v17, %v2710_v51 }
 0x19e   :  { %791 = vrot.lane.b32.xlu1 %v784_v30, %s2493_s23  ;;  %v1316_v30 = vmul.f32 %v2613_v14, %v2695_v45  ;;  %v1365_v45 = vmul.f32 %v2613_v14, %v2710_v51  ;;  %v1392_v51 = vmul.f32 %v2613_v14, %v2720_v55 }
 0x1a1   :  { %769 = vrot.lane.b32.xlu0 %v762_v34, %s2492_s28  ;;  %v1338_v34 = vmul.f32 %v2613_v14, %v2707_v50  ;;  %v1394_v50 = vmul.f32 %v2619_v17, %v2720_v55 }
 0x1a2   :  { %1078 = vrot.lane.b32.xlu1 %v1072_v32, %s2492_s28  ;;  %v1428_v32 = vmul.f32 %v2619_v17, %v2717_v54 }
 0x1a5   :  { %1100 = vrot.lane.b32.xlu0 %v1094_v36, %s2493_s23  ;;  %v1228_v36 = vmul.f32 %v2619_v17, %v2714_v53 }
 0x1a6   :  { %1082 = vrot.lane.b32.xlu1 %v1074_v35, %s2492_s28  ;;  %v3922_v35 = vld [vmem:[#allocation18_spill] sm:$0xff] }
 0x1a9   :  { %1104 = vrot.lane.b32.xlu0 %v1096_v39, %s2493_s23  ;;  %v3923_v39 = vld [vmem:[#allocation17_spill] sm:$0xff] }
 0x1aa   :  { %1124 = vrot.lane.b32.xlu1 %v1116_v33, %s2494_s24 }
 0x1ad   :  { %1178 = vrot.lane.b32.xlu0 %v1170_v12, %s2496_s26 }
 0x1ae   :  { %1128 = vrot.lane.b32.xlu1 %v1118_v38, %s2494_s24 }
 0x1b1   :  { %1182 = vrot.lane.b32.xlu0 %v1172_v40, %s2496_s26 }
 0x1b2   :  { %1151 = vrot.lane.b32.xlu1 %v1143_v26, %s2495_s25  ;;  %v1448_v26 = vstv %s1945_s27 }
 0x1b5   :  { %1322 = vrot.lane.b32.xlu0 %v1316_v30, %s2493_s23  ;;  %v3925_v30 = vld [vmem:[#allocation20_spill] sm:$0xff] }
 0x1b6   :  { %1155 = vrot.lane.b32.xlu1 %v1145_v42, %s2495_s25 }
 0x1b9   :  { %1326 = vrot.lane.b32.xlu0 %v1318_v43, %s2493_s23  ;;  %v1449_v43 = vmul.f32 %v2681_v41, %v1448_v26 }
 0x1ba   :  { %1300 = vrot.lane.b32.xlu1 %v1294_v28, %s2492_s28 }
 0x1bd   :  { %1213 = vrot.lane.b32.xlu0 %v1206_v31, %s2492_s28 }
 0x1be   :  { %1304 = vrot.lane.b32.xlu1 %v1296_v44, %s2492_s28  ;;  %v3926_v44 = vld [vmem:[#allocation8_spill] sm:$0xff] }
 0x1c1   :  { %1373 = vrot.lane.b32.xlu0 %v1365_v45, %s2495_s25  ;;  %v1451_v45 = vmul.f32 %v3926_v44, %v1448_v26 }
 0x1c2   :  { %1346 = vrot.lane.b32.xlu1 %v1338_v34, %s2494_s24 }
 0x1c5   :  { %1377 = vrot.lane.b32.xlu0 %v1367_v47, %s2495_s25 }
 0x1c6   :  { %1350 = vrot.lane.b32.xlu1 %v1340_v46, %s2494_s24 }
 0x1c9   :  { %1435 = vrot.lane.b32.xlu0 %v1428_v32, %s2492_s28 }
 0x1ca   :  { %1235 = vrot.lane.b32.xlu1 %v1228_v36, %s2493_s23  ;;  %v3928_v36 = vld [vmem:[#allocation21_spill] sm:$0xff] }
 0x1cd   :  { %858 = vrot.lane.b32.xlu0 %v2729_v59, %s2492_s28 }
 0x1ce   :  { %1400 = vrot.lane.b32.xlu1 %v1392_v51, %s2496_s26 }
 0x1d1   :  { %880 = vrot.lane.b32.xlu0 %v2733_v60, %s2493_s23 }
 0x1d2   :  { %1404 = vrot.lane.b32.xlu1 %v1394_v50, %s2496_s26 }
 0x1d5   :  { %654 = vrot.lane.b32.xlu0 %v2741_v62, %s2493_s23 }
 0x1d6   :  { %631 = vrot.lane.b32.xlu1 %v2737_v61, %s2492_s28 }
 0x1d9   :  { %908 = vrot.lane.b32.xlu0 %v2747_v0, %s2494_s24 }
 0x1da   :  { %904 = vrot.lane.b32.xlu1 %v2744_v63, %s2494_s24 }
 0x1dd   :  { %931 = vrot.lane.b32.xlu0 %v2754_v2, %s2495_s25 }
 0x1de   :  { %679 = vrot.lane.b32.xlu1 %v2751_v1, %s2494_s24 }
 0x1e1   :  { %707 = vrot.lane.b32.xlu0 %v2762_v4, %s2495_s25 }
 0x1e2   :  { %683 = vrot.lane.b32.xlu1 %v2758_v3, %s2494_s24 }
 0x1e5   :  { %711 = vrot.lane.b32.xlu0 %v2769_v6, %s2495_s25  ;;  %v3914_v6 = vld [vmem:[#allocation9_spill] sm:$0xff] }
 0x1e6   :  { %935 = vrot.lane.b32.xlu1 %v2765_v5, %s2495_s25 }
 0x1e9   :  { %962 = vrot.lane.b32.xlu0 %v2780_v9, %s2496_s26 }
 0x1ea   :  { %958 = vrot.lane.b32.xlu1 %v2773_v7, %s2496_s26 }
 0x1ed   :  { %1011 = vrot.lane.b32.xlu0 %v2788_v11, %s2493_s23  ;;  %v3916_v11 = vld [vmem:[#allocation10_spill] sm:$0xff] }
 0x1ee   :  { %735 = vrot.lane.b32.xlu1 %v2784_v10, %s2496_s26  ;;  %v3915_v10 = vld [vmem:[#allocation11_spill] sm:$0xff] }
 0x1ef   :  { %v3060_v53 = vpop.permute.xlu0 %856 }
 0x1f0   :  { %v3062_v54 = vpop.permute.xlu1 %860 }
 0x1f1   :  { %1015 = vrot.lane.b32.xlu0 %v2798_v15, %s2493_s23 }
 0x1f2   :  { %739 = vrot.lane.b32.xlu1 %v2794_v13, %s2496_s26 }
 0x1f3   :  { %v3068_v55 = vpop.permute.xlu0 %633 }
 0x1f4   :  { %v3070_v59 = vpop.permute.xlu1 %878 }
 0x1f5   :  { %793 = vrot.lane.b32.xlu0 %v2806_v18, %s2493_s23  ;;  %v3918_v18 = vld [vmem:[#allocation12_spill] sm:$0xff] }
 0x1f6   :  { %989 = vrot.lane.b32.xlu1 %v2802_v16, %s2492_s28  ;;  %v3917_v16 = vld [vmem:[#allocation13_spill] sm:$0xff] }
 0x1f7   :  { %v3076_v60 = vpop.permute.xlu0 %902 }
 0x1f8   :  { %v3078_v61 = vpop.permute.xlu1 %882 }
 0x1f9   :  { %1080 = vrot.lane.b32.xlu0 %v2814_v20, %s2492_s28 }
 0x1fa   :  { %993 = vrot.lane.b32.xlu1 %v2810_v19, %s2492_s28 }
 0x1fb   :  { %v3084_v62 = vpop.permute.xlu0 %906 }
 0x1fc   :  { %v3086_v63 = vpop.permute.xlu1 %656 }
 0x1fd   :  { %1126 = vrot.lane.b32.xlu0 %v2822_v22, %s2494_s24  ;;  %v3920_v22 = vld [vmem:[#allocation14_spill] sm:$0xff] }
 0x1fe   :  { %771 = vrot.lane.b32.xlu1 %v2818_v21, %s2492_s28  ;;  %v3919_v21 = vld [vmem:[#allocation15_spill] sm:$0xff] }
 0x1ff   :  { %v3092_v0 = vpop.permute.xlu0 %681 }
 0x200   :  { %v3094_v1 = vpop.permute.xlu1 %929 }
 0x201   :  { %1130 = vrot.lane.b32.xlu0 %v2830_v25, %s2494_s24 }
 0x202   :  { %1102 = vrot.lane.b32.xlu1 %v2826_v24, %s2493_s23 }
 0x203   :  { %v3100_v2 = vpop.permute.xlu0 %956 }
 0x204   :  { %v3102_v3 = vpop.permute.xlu1 %933 }
 0x205   :  { %1153 = vrot.lane.b32.xlu0 %v2839_v29, %s2495_s25 }
 0x206   :  { %1180 = vrot.lane.b32.xlu1 %v2834_v27, %s2496_s26  ;;  %v3921_v27 = vld [vmem:[#allocation16_spill] sm:$0xff] }
 0x207   :  { %v3108_v4 = vpop.permute.xlu0 %960 }
 0x208   :  { %v3110_v5 = vpop.permute.xlu1 %709 }
 0x209   :  { %1157 = vrot.lane.b32.xlu0 %v2847_v37, %s2495_s25 }
 0x20a   :  { %1184 = vrot.lane.b32.xlu1 %v3914_v6, %s2496_s26 }
 0x20b   :  { %v3116_v7 = vpop.permute.xlu0 %737 }
 0x20c   :  { %v3118_v9 = vpop.permute.xlu1 %1013 }
 0x20d   :  { %1302 = vrot.lane.b32.xlu0 %v3915_v10, %s2492_s28 }
 0x20e   :  { %1324 = vrot.lane.b32.xlu1 %v3916_v11, %s2493_s23 }
 0x20f   :  { %v3124_v13 = vpop.permute.xlu0 %991 }
 0x210   :  { %v3126_v15 = vpop.permute.xlu1 %791 }
 0x211   :  { %1348 = vrot.lane.b32.xlu0 %v3917_v16, %s2494_s24 }
 0x212   :  { %1211 = vrot.lane.b32.xlu1 %v3918_v18, %s2492_s28 }
 0x213   :  { %v3132_v19 = vpop.permute.xlu0 %769 }
 0x214   :  { %v3134_v20 = vpop.permute.xlu1 %1078 }
 0x215   :  { %1352 = vrot.lane.b32.xlu0 %v3919_v21, %s2494_s24 }
 0x216   :  { %1215 = vrot.lane.b32.xlu1 %v3920_v22, %s2492_s28 }
 0x217   :  { %v3140_v24 = vpop.permute.xlu0 %1100 }
 0x218   :  { %v3142_v25 = vpop.permute.xlu1 %1082 }
 0x219   :  { %1233 = vrot.lane.b32.xlu0 %v2882_v56, %s2493_s23  ;;  %v3924_v56 = vld [vmem:[#allocation19_spill] sm:$0xff] }
 0x21a   :  { %1375 = vrot.lane.b32.xlu1 %v3921_v27, %s2495_s25  ;;  %v844_v27 = vstv %s1917_s0  ;;  %s2500_s0 = smov 116  }
 0x21b   :  { %v3148_v29 = vpop.permute.xlu0 %1104 }
 0x21c   :  { %v3150_v37 = vpop.permute.xlu1 %1124 }
 0x21d   :  { %1237 = vrot.lane.b32.xlu0 %v3922_v35, %s2493_s23 }
 0x21e   :  { %1379 = vrot.lane.b32.xlu1 %v3923_v39, %s2495_s25  ;;  %v3226_v39 = vstv %s616_s29  ;;  %s2501_s29 = smov 61  }
 0x21f   :  { %v3156_v33 = vpop.permute.xlu0 %1178 }
 0x220   :  { %v3158_v12 = vpop.permute.xlu1 %1128 }
 0x221   :  { %1402 = vrot.lane.b32.xlu0 %v2898_v58, %s2496_s26  ;;  %v1450_v58 = vmul.f32 %v2619_v17, %v1448_v26 }
 0x222   :  { %1433 = vrot.lane.b32.xlu1 %v3924_v56, %s2492_s28  ;;  %v847_v56 = vmul.f32 %v2619_v17, %v844_v27 }
 0x223   :  { %v3164_v38 = vpop.permute.xlu0 %1182 }
 0x224   :  { %v3166_v40 = vpop.permute.xlu1 %1151 }
 0x225   :  { %1406 = vrot.lane.b32.xlu0 %v2907_v57, %s2496_s26 }
 0x226   :  { %1437 = vrot.lane.b32.xlu1 %v3925_v30, %s2492_s28 }
 0x227   :  { %v3172_v42 = vpop.permute.xlu0 %1322 }
 0x228   :  { %v3175_v28 = vpop.permute.xlu1 %1155 }
 0x229   :  { %1455 = vrot.lane.b32.xlu0 %v1449_v43, %s2493_s23 }
 0x22a   :  { %1457 = vrot.lane.b32.xlu1 %v1450_v58, %s2493_s23  ;;  %v846_v58 = vmul.f32 %v2681_v41, %v844_v27 }
 0x22b   :  { %v3180_v31 = vpop.permute.xlu0 %1326 }
 0x22c   :  { %v3183_v57 = vpop.permute.xlu1 %1300 }
 0x22d   :  { %1459 = vrot.lane.b32.xlu0 %v1451_v45, %s2493_s23  ;;  %v845_v45 = vmul.f32 %v2613_v14, %v844_v27 }
 0x22e   :  { %629 = vrot.lane.b32.xlu1 %v2914_v8, %s2492_s28 }
 0x22f   :  { %v3188_v34 = vpop.permute.xlu0 %1213 }
 0x230   :  { %v3190_v47 = vpop.permute.xlu1 %1304 }
 0x231   :  { %652 = vrot.lane.b32.xlu0 %v2918_v49, %s2493_s23  ;;  %v3931_v49 = vld [vmem:[#allocation22_spill] sm:$0xff] }
 0x232   :  { %677 = vrot.lane.b32.xlu1 %v2922_v52, %s2494_s24 }
 0x233   :  { %v3196_v46 = vpop.permute.xlu0 %1373 }
 0x234   :  { %3927 = vst [vmem:[#allocation9_spill] sm:$0xff] %v3196_v46  ;;  %v3198_v32 = vpop.permute.xlu1 %1346 }
 0x235   :  { %705 = vrot.lane.b32.xlu0 %v2926_v48, %s2495_s25 }
 0x236   :  { %733 = vrot.lane.b32.xlu1 %v3928_v36, %s2496_s26  ;;  %v619_v36 = vmul.f32 %v2681_v41, %v3226_v39 }
 0x237   :  { %v3204_v8 = vpop.permute.xlu0 %1377 }
 0x238   :  { %3929 = vst [vmem:[#allocation11_spill] sm:$0xff] %v3204_v8  ;;  %v3206_v51 = vpop.permute.xlu1 %1350 }
 0x239   :  { %3930 = vst [vmem:[#allocation10_spill] sm:$0xff] %v3206_v51  ;;  %767 = vrot.lane.b32.xlu0 %v2934_v23, %s2492_s28  ;;  %v620_v51 = vmul.f32 %v2619_v17, %v3226_v39 }
 0x23a   :  { %789 = vrot.lane.b32.xlu1 %v3931_v49, %s2493_s23 }
 0x23b   :  { %v3212_v52 = vpop.permute.xlu0 %1435 }
 0x23c   :  { %3932 = vst [vmem:[#allocation13_spill] sm:$0xff] %v3212_v52  ;;  %v3214_v50 = vpop.permute.xlu1 %1235  ;;  %v974_v52 = vstv %s1923_s30 }
 0x23f   :  { %v859_v6 = vpop.permute.xlu0 %858 }
 0x240   :  { %v3216_v10 = vpop.permute.xlu1 %1400  ;;  %v862_v26 = vsel %vm635_vm0, %v3060_v53, %v859_v6  ;;  %v863_v30 = vsel %vm635_vm0, %v859_v6, %v3062_v54 }
 0x241   :  { %3933 = vst [vmem:[#allocation12_spill] sm:$0xff] %v3216_v10  ;;  %v867_v8 = vadd.f32 %v862_v26, %v845_v45  ;;  %v868_v46 = vadd.f32 %v863_v30, %v846_v58 }
 0x243   :  { %v881_v48 = vpop.permute.xlu0 %880 }
 0x244   :  { %v3218_v11 = vpop.permute.xlu1 %1404  ;;  %v884_v53 = vsel %vm658_vm1, %v3070_v59, %v881_v48  ;;  %v885_v6 = vsel %vm658_vm1, %v881_v48, %v3078_v61 }
 0x245   :  { %3934 = vst [vmem:[#allocation15_spill] sm:$0xff] %v3218_v11  ;;  %v869_v11 = vadd.f32 %v3062_v54, %v847_v56  ;;  %v889_v26 = vadd.f32 %v884_v53, %v867_v8  ;;  %v890_v30 = vadd.f32 %v885_v6, %v868_v46  ;;  %v976_v8 = vmul.f32 %v2619_v17, %v974_v52 }
 0x247   :  { %v3220_v16 = vpop.permute.xlu0 %654  ;;  %v891_v54 = vadd.f32 %v3078_v61, %v869_v11 }
 0x248   :  { %v3222_v18 = vpop.permute.xlu1 %631  ;;  %v660_v46 = vsel %vm658_vm1, %v3220_v16, %v3086_v63 }
 0x249   :  { %3935 = vst [vmem:[#allocation14_spill] sm:$0xff] %v3222_v18  ;;  %v637_v10 = vsel %vm635_vm0, %v3222_v18, %v3068_v55 }
 0x24a   :  { %v642_v58 = vadd.f32 %v637_v10, %v619_v36 }
 0x24b   :  { %v909_v23 = vpop.permute.xlu0 %908 }
 0x24c   :  { %v905_v21 = vpop.permute.xlu1 %904  ;;  %v912_v27 = vsel %vm685_vm2, %v3084_v62, %v909_v23  ;;  %v665_v53 = vadd.f32 %v660_v46, %v642_v58 }
 0x24d   :  { %v910_v59 = vsel %vm685_vm2, %v3076_v60, %v905_v21  ;;  %v911_v48 = vsel %vm685_vm2, %v905_v21, %v3084_v62  ;;  %v918_v23 = vadd.f32 %v912_v27, %v891_v54  ;;  %v975_v21 = vmul.f32 %v2681_v41, %v974_v52 }
 0x24e   :  { %v916_v11 = vadd.f32 %v910_v59, %v889_v26  ;;  %v917_v62 = vadd.f32 %v911_v48, %v890_v30 }
 0x24f   :  { %v932_v22 = vpop.permute.xlu0 %931 }
 0x250   :  { %v3224_v35 = vpop.permute.xlu1 %679  ;;  %v937_v18 = vsel %vm713_vm3, %v3094_v1, %v932_v22  ;;  %v938_v61 = vsel %vm713_vm3, %v932_v22, %v3102_v3  ;;  %v977_v22 = vmul.f32 %v3926_v44, %v974_v52  ;;  %v643_v52 = vadd.f32 %v3068_v55, %v620_v51 }
 0x251   :  { %v687_v1 = vsel %vm685_vm2, %v3224_v35, %v3092_v0  ;;  %v944_v6 = vadd.f32 %v938_v61, %v917_v62 }
 0x252   :  { %v693_v58 = vadd.f32 %v687_v1, %v665_v53  ;;  %v666_v62 = vadd.f32 %v3086_v63, %v643_v52  ;;  %v1026_v52 = vstv %s1926_s9  ;;  %s2506_s9 = smov 104  }
 0x253   :  { %v3233_v43 = vpop.permute.xlu0 %707 }
 0x254   :  { %v684_v49 = vpop.permute.xlu1 %683  ;;  %v715_v59 = vsel %vm713_vm3, %v3233_v43, %v3110_v5 }
 0x255   :  { %v721_v46 = vadd.f32 %v715_v59, %v693_v58 }
 0x257   :  { %v712_v56 = vpop.permute.xlu0 %711 }
 0x258   :  { %v936_v45 = vpop.permute.xlu1 %935  ;;  %v716_v55 = vsel %vm713_vm3, %v3110_v5, %v712_v56 }
 0x259   :  { %v939_v60 = vsel %vm713_vm3, %v3102_v3, %v936_v45  ;;  %v943_v3 = vadd.f32 %v937_v18, %v916_v11  ;;  %v3286_v11 = vstv %s3256_s7  ;;  %s2503_s7 = smov 43  }
 0x25a   :  { %v945_v10 = vadd.f32 %v939_v60, %v918_v23  ;;  %v688_v23 = vsel %vm685_vm2, %v3092_v0, %v684_v49  ;;  %v754_v49 = vmul.f32 %v2619_v17, %v3286_v11  ;;  %v755_v5 = vmul.f32 %v3926_v44, %v3286_v11 }
 0x25b   :  { %v963_v36 = vpop.permute.xlu0 %962  ;;  %v694_v1 = vadd.f32 %v688_v23, %v666_v62 }
 0x25c   :  { %v959_v27 = vpop.permute.xlu1 %958  ;;  %v966_v54 = vsel %vm741_vm4, %v3108_v4, %v963_v36 }
 0x25d   :  { %v964_v48 = vsel %vm741_vm4, %v3100_v2, %v959_v27  ;;  %v965_v26 = vsel %vm741_vm4, %v959_v27, %v3108_v4  ;;  %v972_v30 = vadd.f32 %v966_v54, %v945_v10  ;;  %v722_v63 = vadd.f32 %v716_v55, %v694_v1 }
 0x25e   :  { %v970_v18 = vadd.f32 %v964_v48, %v943_v3  ;;  %v971_v45 = vadd.f32 %v965_v26, %v944_v6  ;;  %v1066_v26 = vstv %s1927_s8  ;;  %s2504_s8 = smov 110  }
 0x25f   :  { %v1012_v61 = vpop.permute.xlu0 %1011  ;;  %v980_v60 = vadd.f32 %v977_v22, %v972_v30  ;;  %v1069_v23 = vmul.f32 %v2619_v17, %v1066_v26 }
 0x260   :  { %v3289_v2 = vpop.permute.xlu1 %735  ;;  %v978_v36 = vadd.f32 %v975_v21, %v970_v18  ;;  %v979_v4 = vadd.f32 %v976_v8, %v971_v45  ;;  %v1017_v59 = vsel %vm658_vm1, %v1012_v61, %v3118_v9  ;;  %v1067_v61 = vmul.f32 %v2613_v14, %v1066_v26 }
 0x261   :  { %v743_v51 = vsel %vm741_vm4, %v3289_v2, %v3116_v7 }
 0x262   :  { %v749_v0 = vadd.f32 %v743_v51, %v721_v46 }
 0x263   :  { %v1016_v10 = vpop.permute.xlu0 %1015 }
 0x264   :  { %v740_v22 = vpop.permute.xlu1 %739  ;;  %v757_v53 = vadd.f32 %v754_v49, %v749_v0  ;;  %v1018_v62 = vsel %vm658_vm1, %v3118_v9, %v1016_v10  ;;  %v1068_v49 = vmul.f32 %v2681_v41, %v1066_v26 }
 0x265   :  { %v744_v21 = vsel %vm741_vm4, %v3116_v7, %v740_v22 }
 0x266   :  { %v750_v8 = vadd.f32 %v744_v21, %v722_v63  ;;  %v3323_v63 = vstv %s1916_s10  ;;  %s2508_s10 = smov 98  }
 0x267   :  { %v794_v56 = vpop.permute.xlu0 %793 }
 0x268   :  { %v990_v3 = vpop.permute.xlu1 %989  ;;  %v758_v6 = vadd.f32 %v755_v5, %v750_v8  ;;  %v796_v8 = vsel %vm658_vm1, %v3126_v15, %v794_v56 }
 0x269   :  { %v995_v27 = vsel %vm635_vm0, %v990_v3, %v3124_v13 }
 0x26a   :  { %v1000_v54 = vadd.f32 %v995_v27, %v978_v36  ;;  %v3311_v36 = vstv %s1933_s3  ;;  %s2507_s3 = smov 37  }
 0x26b   :  { %v1081_v48 = vpop.permute.xlu0 %1080 }
 0x26c   :  { %v1022_v7 = vadd.f32 %v1017_v59, %v1000_v54  ;;  %v994_v30 = vpop.permute.xlu1 %993  ;;  %v1084_v51 = vsel %vm635_vm0, %v3134_v20, %v1081_v48  ;;  %v1091_v20 = vadd.f32 %v3142_v25, %v1069_v23 }
 0x26d   :  { %v996_v58 = vsel %vm635_vm0, %v3124_v13, %v994_v30  ;;  %v1002_v18 = vadd.f32 %v994_v30, %v980_v60  ;;  %v1085_v60 = vsel %vm635_vm0, %v1081_v48, %v3142_v25 }
 0x26e   :  { %v1001_v45 = vadd.f32 %v996_v58, %v979_v4  ;;  %v3316_v0 = vadd.f32 %v1026_v52, %v1022_v7  ;;  %v1090_v27 = vadd.f32 %v1085_v60, %v1068_v49 }
 0x26f   :  { %v1127_v46 = vpop.permute.xlu0 %1126  ;;  %v1024_v13 = vadd.f32 %v1016_v10, %v1002_v18  ;;  %v1089_v10 = vadd.f32 %v1084_v51, %v1067_v61 }
 0x270   :  { %v1023_v55 = vadd.f32 %v1018_v62, %v1001_v45  ;;  %v772_v1 = vpop.permute.xlu1 %771  ;;  %v1133_v45 = vsel %vm685_vm2, %v1127_v46, %v3158_v12 }
 0x271   :  { %v774_v4 = vsel %vm635_vm0, %v3132_v19, %v772_v1  ;;  %v780_v9 = vadd.f32 %v772_v1, %v758_v6  ;;  %v1030_v6 = vmax.f32 %v3316_v0, 0.0  ;;  %v3332_v26 = vadd.f32 %v1026_v52, %v1024_v13 }
 0x272   :  { %v779_v22 = vadd.f32 %v774_v4, %v757_v53  ;;  %v3325_v21 = vadd.f32 %v1026_v52, %v1023_v55  ;;  %v1132_v52 = vsel %vm685_vm2, %v3150_v37, %v1127_v46  ;;  %v1113_v37 = vadd.f32 %v3148_v29, %v1091_v20 }
 0x273   :  { %v802_v5 = vadd.f32 %v794_v56, %v780_v9  ;;  %v1131_v3 = vpop.permute.xlu0 %1130  ;;  %v1197_v9 = vmul.f32 %v2681_v41, %v3311_v36 }
 0x274   :  { %v801_v54 = vadd.f32 %v796_v8, %v779_v22  ;;  %v1103_v59 = vpop.permute.xlu1 %1102  ;;  %v1031_v48 = vmax.f32 %v3325_v21, 0.0 }
 0x275   :  { %v3335_v53 = vadd.f32 %v3323_v63, %v802_v5  ;;  %v1106_v25 = vsel %vm658_vm1, %v3140_v24, %v1103_v59  ;;  %v1107_v7 = vsel %vm658_vm1, %v1103_v59, %v3148_v29  ;;  %v1134_v24 = vsel %vm685_vm2, %v3158_v12, %v1131_v3 }
 0x276   :  { %v1111_v56 = vadd.f32 %v1106_v25, %v1089_v10  ;;  %v1112_v30 = vadd.f32 %v1107_v7, %v1090_v27  ;;  %v2413_v58 = vpack.i.bf16 %v1031_v48, %v1030_v6  ;;  %v3346_v18 = vadd.f32 %v3323_v63, %v801_v54 }
 0x277   :  { %v1154_v23 = vpop.permute.xlu0 %1153  ;;  %v810_v62 = vmax.f32 %v3335_v53, 0.0  ;;  %v1032_v12 = vmax.f32 %v3332_v26, 0.0  ;;  %v1140_v49 = vadd.f32 %v1134_v24, %v1113_v37 }
 0x278   :  { %v1181_v55 = vpop.permute.xlu1 %1180  ;;  %v1138_v61 = vadd.f32 %v1132_v52, %v1111_v56  ;;  %v1139_v51 = vadd.f32 %v1133_v45, %v1112_v30  ;;  %v1159_v1 = vsel %vm713_vm3, %v3166_v40, %v1154_v23  ;;  %v1160_v13 = vsel %vm713_vm3, %v1154_v23, %v3175_v28  ;;  %2414 = vrot.lane.b32.xlu0 %v2413_v58, %s2492_s28 }
 0x279   :  { %v809_v46 = vmax.f32 %v3346_v18, 0.0  ;;  %v1186_v40 = vsel %vm741_vm4, %v3156_v33, %v1181_v55  ;;  %v1187_v22 = vsel %vm741_vm4, %v1181_v55, %v3164_v38  ;;  %v1198_v33 = vmul.f32 %v2619_v17, %v3311_v36 }
 0x27a   :  { %v1165_v60 = vadd.f32 %v1159_v1, %v1138_v61  ;;  %v1166_v4 = vadd.f32 %v1160_v13, %v1139_v51  ;;  %v1288_v45 = vstv %s1937_s11  ;;  %s2509_s11 = smov 31  }
 0x27b   :  { %v1158_v8 = vpop.permute.xlu0 %1157  ;;  %v2418_v29 = vpack.i.bf16 %v810_v62, %v809_v46  ;;  %v1290_v61 = vmul.f32 %v2681_v41, %v1288_v45  ;;  %v1291_v13 = vmul.f32 %v2619_v17, %v1288_v45 }
 0x27c   :  { %v1192_v20 = vadd.f32 %v1186_v40, %v1165_v60  ;;  %v1193_v10 = vadd.f32 %v1187_v22, %v1166_v4  ;;  %v1185_v5 = vpop.permute.xlu1 %1184  ;;  %v1161_v3 = vsel %vm713_vm3, %v3175_v28, %v1158_v8  ;;  %1040 = vrot.lane.b32.xlu0 %v1032_v12, %s2492_s28  ;;  %v1199_v28 = vmul.f32 %v3926_v44, %v3311_v36 }
 0x27d   :  { %v1167_v27 = vadd.f32 %v1161_v3, %v1140_v49  ;;  %2419 = vrot.lane.b32.xlu1 %v2418_v29, %s2492_s28  ;;  %v1188_v54 = vsel %vm741_vm4, %v3164_v38, %v1185_v5  ;;  %v1289_v38 = vmul.f32 %v2613_v14, %v1288_v45  ;;  %v3936_v3 = vld [vmem:[#allocation10_spill] sm:$0xff]  ;;  %v3938_v45 = vld [vmem:[#allocation11_spill] sm:$0xff] }
 0x27e   :  { %v1200_v59 = vadd.f32 %v1197_v9, %v1192_v20  ;;  %v1201_v25 = vadd.f32 %v1198_v33, %v1193_v10 }
 0x27f   :  { %v1194_v7 = vadd.f32 %v1188_v54, %v1167_v27  ;;  %v1303_v56 = vpop.permute.xlu0 %1302  ;;  %v1248_v27 = vstv %s1936_s12 }
 0x280   :  { %v1325_v30 = vpop.permute.xlu1 %1324  ;;  %v1306_v23 = vsel %vm635_vm0, %v3183_v57, %v1303_v56  ;;  %v1307_v55 = vsel %vm635_vm0, %v1303_v56, %v3190_v47  ;;  %v1313_v57 = vadd.f32 %v3190_v47, %v1291_v13  ;;  %v1418_v56 = vstv %s1943_s2 }
 0x281   :  { %v1202_v58 = vadd.f32 %v1199_v28, %v1194_v7  ;;  %v1311_v37 = vadd.f32 %v1306_v23, %v1289_v38  ;;  %v1312_v60 = vadd.f32 %v1307_v55, %v1290_v61  ;;  %v1328_v49 = vsel %vm658_vm1, %v3172_v42, %v1325_v30 }
 0x282   :  { %v1329_v40 = vsel %vm658_vm1, %v1325_v30, %v3180_v31  ;;  %v1335_v54 = vadd.f32 %v3180_v31, %v1313_v57  ;;  %v3937_v30 = vld [vmem:[#allocation9_spill] sm:$0xff]  ;;  %v1419_v61 = vmul.f32 %v2681_v41, %v1418_v56 }
 0x283   :  { %v1349_v52 = vpop.permute.xlu0 %1348  ;;  %v1333_v20 = vadd.f32 %v1328_v49, %v1311_v37  ;;  %v1334_v10 = vadd.f32 %v1329_v40, %v1312_v60  ;;  %v3940_v40 = vld [vmem:[#allocation15_spill] sm:$0xff] }
 0x284   :  { %v1212_v24 = vpop.permute.xlu1 %1211  ;;  %v1354_v47 = vsel %vm685_vm2, %v3198_v32, %v1349_v52  ;;  %v1355_v33 = vsel %vm685_vm2, %v1349_v52, %v3936_v3 }
 0x285   :  { %v1217_v36 = vsel %vm635_vm0, %v1212_v24, %v3188_v34  ;;  %v1360_v23 = vadd.f32 %v1354_v47, %v1333_v20  ;;  %v1361_v55 = vadd.f32 %v1355_v33, %v1334_v10 }
 0x286   :  { %v1222_v4 = vadd.f32 %v1217_v36, %v1200_v59 }
 0x287   :  { %v1353_v51 = vpop.permute.xlu0 %1352 }
 0x288   :  { %v1216_v1 = vpop.permute.xlu1 %1215 }
 0x289   :  { %v1218_v22 = vsel %vm635_vm0, %v3188_v34, %v1216_v1  ;;  %v1224_v42 = vadd.f32 %v1216_v1, %v1202_v58  ;;  %v1356_v34 = vsel %vm685_vm2, %v3936_v3, %v1353_v51  ;;  %v1420_v51 = vmul.f32 %v2619_v17, %v1418_v56 }
 0x28a   :  { %v1223_v59 = vadd.f32 %v1218_v22, %v1201_v25  ;;  %v1362_v36 = vadd.f32 %v1356_v34, %v1335_v54  ;;  %v1421_v54 = vmul.f32 %v3926_v44, %v1418_v56  ;;  %v3941_v34 = vld [vmem:[#allocation13_spill] sm:$0xff] }
 0x28b   :  { %v1234_v9 = vpop.permute.xlu0 %1233 }
 0x28c   :  { %v1376_v8 = vpop.permute.xlu1 %1375  ;;  %v1239_v29 = vsel %vm658_vm1, %v1234_v9, %v3214_v50  ;;  %v3939_v9 = vld [vmem:[#allocation12_spill] sm:$0xff] }
 0x28d   :  { %v1244_v5 = vadd.f32 %v1239_v29, %v1222_v4  ;;  %v1381_v28 = vsel %vm713_vm3, %v3937_v30, %v1376_v8  ;;  %v1382_v24 = vsel %vm713_vm3, %v1376_v8, %v3938_v45 }
 0x28e   :  { %v1387_v1 = vadd.f32 %v1381_v28, %v1360_v23  ;;  %v1388_v13 = vadd.f32 %v1382_v24, %v1361_v55 }
 0x28f   :  { %v1238_v7 = vpop.permute.xlu0 %1237  ;;  %v3416_v31 = vadd.f32 %v1248_v27, %v1244_v5 }
 0x290   :  { %v1380_v32 = vpop.permute.xlu1 %1379  ;;  %v1240_v52 = vsel %vm658_vm1, %v3214_v50, %v1238_v7  ;;  %v1246_v58 = vadd.f32 %v1238_v7, %v1224_v42 }
 0x291   :  { %v1245_v25 = vadd.f32 %v1240_v52, %v1223_v59  ;;  %v1383_v50 = vsel %vm713_vm3, %v3938_v45, %v1380_v32  ;;  %v1252_v17 = vmax.f32 %v3416_v31, 0.0  ;;  %v1470_v52 = vstv %s1946_s13 }
 0x292   :  { %v3418_v38 = vadd.f32 %v1248_v27, %v1246_v58  ;;  %v1389_v10 = vadd.f32 %v1383_v50, %v1362_v36 }
 0x293   :  { %v3422_v37 = vadd.f32 %v1248_v27, %v1245_v25  ;;  %v1403_v60 = vpop.permute.xlu0 %1402 }
 0x294   :  { %v1254_v57 = vmax.f32 %v3418_v38, 0.0  ;;  %v1434_v4 = vpop.permute.xlu1 %1433  ;;  %v1408_v49 = vsel %vm741_vm4, %v3939_v9, %v1403_v60  ;;  %v1409_v22 = vsel %vm741_vm4, %v1403_v60, %v3940_v40  ;;  %v3942_v60 = vld [vmem:[#allocation14_spill] sm:$0xff] }
 0x295   :  { %v1253_v8 = vmax.f32 %v3422_v37, 0.0  ;;  %v1414_v29 = vadd.f32 %v1408_v49, %v1387_v1  ;;  %v1415_v20 = vadd.f32 %v1409_v22, %v1388_v13  ;;  %v1439_v7 = vsel %vm635_vm0, %v1434_v4, %v3941_v34 }
 0x296   :  { %1262 = vrot.lane.b32.xlu0 %v1254_v57, %s2492_s28  ;;  %v618_v13 = vmul.f32 %v2613_v14, %v3226_v39 }
 0x297   :  { %v2423_v5 = vpack.i.bf16 %v1253_v8, %v1252_v17  ;;  %v1422_v47 = vadd.f32 %v1419_v61, %v1414_v29  ;;  %v1423_v3 = vadd.f32 %v1420_v51, %v1415_v20  ;;  %v1407_v33 = vpop.permute.xlu0 %1406 }
 0x298   :  { %v1438_v42 = vpop.permute.xlu1 %1437  ;;  %v1410_v27 = vsel %vm741_vm4, %v3940_v40, %v1407_v33 }
 0x299   :  { %v1416_v59 = vadd.f32 %v1410_v27, %v1389_v10  ;;  %2424 = vrot.lane.b32.xlu1 %v2423_v5, %s2492_s28  ;;  %v1440_v45 = vsel %vm635_vm0, %v3941_v34, %v1438_v42  ;;  %v1444_v32 = vadd.f32 %v1439_v7, %v1422_v47 }
 0x29a   :  { %v1445_v25 = vadd.f32 %v1440_v45, %v1423_v3 }
 0x29b   :  { %v1424_v30 = vadd.f32 %v1421_v54, %v1416_v59  ;;  %v1456_v28 = vpop.permute.xlu0 %1455 }
 0x29c   :  { %v1458_v24 = vpop.permute.xlu1 %1457 }
 0x29d   :  { %v1461_v58 = vsel %vm658_vm1, %v1456_v28, %v1458_v24  ;;  %v1446_v23 = vadd.f32 %v1438_v42, %v1424_v30 }
 0x29e   :  { %v1466_v55 = vadd.f32 %v1461_v58, %v1444_v32 }
 0x29f   :  { %v1460_v44 = vpop.permute.xlu0 %1459 }
 0x2a0   :  { %v3449_v56 = vadd.f32 %v1470_v52, %v1466_v55  ;;  %v1462_v61 = vsel %vm658_vm1, %v1458_v24, %v1460_v44  ;;  %v1468_v51 = vadd.f32 %v1460_v44, %v1446_v23  ;;  %v630_v36 = vpop.permute.xlu1 %629 }
 0x2a1   :  { %v1467_v1 = vadd.f32 %v1462_v61, %v1445_v25  ;;  %v636_v50 = vsel %vm635_vm0, %v630_v36, %v3942_v60 }
 0x2a2   :  { %v1474_v4 = vmax.f32 %v3449_v56, 0.0  ;;  %v3457_v9 = vadd.f32 %v1470_v52, %v1468_v51  ;;  %v641_v40 = vadd.f32 %v636_v50, %v618_v13  ;;  %v1592_v56 = vld [vmem:[%s3889_s4 + $0x88] sm:$0xff] }
 0x2a3   :  { %v3459_v49 = vadd.f32 %v1470_v52, %v1467_v1  ;;  %v653_v22 = vpop.permute.xlu0 %652 }
 0x2a4   :  { %v1476_v29 = vmax.f32 %v3457_v9, 0.0  ;;  %v659_v20 = vsel %vm658_vm1, %v653_v22, %v3220_v16  ;;  %1480 = vrot.lane.b32.xlu1 %v1474_v4, %s2492_s28  ;;  %v678_v14 = vpop.permute.xlu1 %677  ;;  %v1576_v9 = vld [vmem:[%s3889_s4 + $0x8] sm:$0xff] }
 0x2a5   :  { %v1475_v39 = vmax.f32 %v3459_v49, 0.0  ;;  %v664_v10 = vadd.f32 %v659_v20, %v641_v40  ;;  %v686_v5 = vsel %vm685_vm2, %v678_v14, %v3224_v35  ;;  %v753_v35 = vmul.f32 %v2681_v41, %v3286_v11  ;;  %v1594_v20 = vld [vmem:[%s3889_s4 + $0x98] sm:$0xff] }
 0x2a6   :  { %v2497_v14 = vmov 0.0|0.0   ;;  %vm1674_vm2 = vcmask 752640  }
 0x2a7   :  { %v692_v47 = vadd.f32 %v686_v5, %v664_v10  ;;  %1482 = vrot.lane.b32.xlu0 %v1475_v39, %s2492_s28  ;;  %v706_v3 = vpop.permute.xlu0 %705  ;;  %2340 = vmatprep.subr.bf16.mxu0 %v2497_v14  ;;  %v1577_v5 = vld [vmem:[%s3889_s4 + $0x10] sm:$0xff] }
 0x2a8   :  { %v714_v33 = vsel %vm713_vm3, %v706_v3, %v3233_v43  ;;  %1484 = vrot.lane.b32.xlu1 %v1476_v29, %s2492_s28  ;;  %v734_v16 = vpop.permute.xlu1 %733  ;;  %v1595_v3 = vld [vmem:[%s3889_s4 + $0xa0] sm:$0xff]  ;;  %vm1571_vm3 = vcmask 801792  }
 0x2a9   :  { %v720_v42 = vadd.f32 %v714_v33, %v692_v47  ;;  %v742_v27 = vsel %vm741_vm4, %v734_v16, %v3289_v2  ;;  %v1578_v47 = vld [vmem:[%s3889_s4 + $0x18] sm:$0xff]  ;;  %v1596_v33 = vld [vmem:[%s3889_s4 + $0xa8] sm:$0xff]  ;;  %vm1894_vm4 = vcmask 261120  }
 0x2aa   :  { %v2282_v16 = vpack.c.bf16 %v1578_v47, %v1577_v5 }
 0x2ab   :  { %v748_v54 = vadd.f32 %v742_v27, %v720_v42  ;;  %v768_v59 = vpop.permute.xlu0 %767  ;;  %v2284_v42 = vpack.c.bf16 %v1596_v33, %v1595_v3  ;;  %v1579_v27 = vld [vmem:[%s3889_s4 + $0x20] sm:$0xff]  ;;  %v1624_v33 = vld [vmem:[%s3889_s4 + $0x188] sm:$0xff] }
 0x2ac   :  { %v790_v7 = vpop.permute.xlu1 %789  ;;  %v773_v30 = vsel %vm635_vm0, %v768_v59, %v3132_v19  ;;  %v1598_v59 = vld [vmem:[%s3889_s4 + $0xb8] sm:$0xff]  ;;  %v1623_v3 = vld [vmem:[%s3889_s4 + $0x180] sm:$0xff] }
 0x2ad   :  { %v756_v34 = vadd.f32 %v753_v35, %v748_v54  ;;  %v795_v28 = vsel %vm658_vm1, %v790_v7, %v3126_v15  ;;  %v1580_v54 = vld [vmem:[%s3889_s4 + $0x28] sm:$0xff]  ;;  %v1597_v35 = vld [vmem:[%s3889_s4 + $0xb0] sm:$0xff]  ;;  %vm1573_vm1 = vcmask 252928  }
 0x2ae   :  { %v1640_v7 = vld [vmem:[%s3889_s4 + $0x208] sm:$0xff] }
 0x2af   :  { %v778_v43 = vadd.f32 %v773_v30, %v756_v34  ;;  %v1639_v34 = vld [vmem:[%s3889_s4 + $0x200] sm:$0xff]  ;;  %v2286_v30 = vpack.c.bf16 %v1580_v54, %v1579_v27  ;;  %v1648_v27 = vld [vmem:[%s3889_s4 + $0x248] sm:$0xff] }
 0x2b1   :  { %v800_v45 = vadd.f32 %v795_v28, %v778_v43  ;;  %v2341_v43 = vpack.c.bf16 %v1640_v7, %v1639_v34  ;;  %v1641_v28 = vld [vmem:[%s3889_s4 + $0x210] sm:$0xff] }
 0x2b3   :  { %v3485_v24 = vadd.f32 %v3323_v63, %v800_v45  ;;  %2342 = vmatpush1.bf16.msra.mxu0 %v2341_v43 }
 0x2b4   :  { %2343 = vmatprep.subr.bf16.mxu0 %v2497_v14 }
 0x2b5   :  { %v808_v2 = vmax.f32 %v3485_v24, 0.0  ;;  %v1583_v24 = vld [vmem:[%s3889_s4 + $0x40] sm:$0xff] }
 0x2b7   :  { %814 = vrot.lane.b32.xlu0 %v808_v2, %s2492_s28  ;;  %s2499_s28 = smov 55  }
 0x2ea   :  { %v2415_v41 = vpop.permute.xlu0 %2414 }
 0x2eb   :  { %v2417_v11 = vunpack.i.h.bf16 %v2415_v41  ;;  %v2416_v32 = vunpack.i.l.bf16 %v2415_v41  ;;  %v2288_v41 = vpack.c.bf16 %v1598_v59, %v1597_v35 }
 0x2ed   :  { %v1042_v19 = vsel %vm635_vm0, %v2416_v32, %v2417_v11  ;;  %v1582_v32 = vld [vmem:[%s3889_s4 + $0x38] sm:$0xff] }
 0x2ee   :  { %v1041_v52 = vpop.permute.xlu0 %1040  ;;  %v3499_v55 = vmax.f32 %v1030_v6, %v1042_v19 }
 0x2ef   :  { %v3492_v58 = vpop.permute.xlu1 %2419  ;;  %v1043_v15 = vsel %vm635_vm0, %v2417_v11, %v1041_v52  ;;  %v3524_v21 = vmax.f32 %v1032_v12, %v1041_v52  ;;  %v1581_v11 = vld [vmem:[%s3889_s4 + $0x30] sm:$0xff]  ;;  %v1642_v52 = vld [vmem:[%s3889_s4 + $0x218] sm:$0xff] }
 0x2f0   :  { %v2422_v23 = vunpack.i.h.bf16 %v3492_v58  ;;  %v2421_v63 = vunpack.i.l.bf16 %v3492_v58  ;;  %v3510_v61 = vmax.f32 %v1031_v48, %v1043_v15  ;;  %v1599_v15 = vld [vmem:[%s3889_s4 + $0xc0] sm:$0xff] }
 0x2f1   :  { %v1643_v58 = vld [vmem:[%s3889_s4 + $0x220] sm:$0xff] }
 0x2f2   :  { %v3503_v25 = vmax.f32 %v810_v62, %v2422_v23  ;;  %v821_v44 = vsel %vm635_vm0, %v2421_v63, %v2422_v23  ;;  %v1600_v23 = vld [vmem:[%s3889_s4 + $0xc8] sm:$0xff] }
 0x2f3   :  { %v3514_v51 = vmax.f32 %v809_v46, %v821_v44  ;;  %v2344_v44 = vpack.c.bf16 %v1642_v52, %v1641_v28  ;;  %v1651_v52 = vld [vmem:[%s3889_s4 + $0x260] sm:$0xff] }
 0x2f4   :  { %v2428_v0 = vpack.i.bf16 %v3499_v55, %v3503_v25 }
 0x2f5   :  { %v2433_v6 = vpack.i.bf16 %v3510_v61, %v3514_v51  ;;  %2345 = vmatpush1.bf16.msra.mxu0 %v2344_v44  ;;  %v1655_v44 = vld [vmem:[%s3889_s4 + $0x280] sm:$0xff] }
 0x2f6   :  { %2429 = vrot.lane.b32.xlu1 %v2428_v0, %s2494_s24  ;;  %2346 = vmatprep.subr.bf16.mxu0 %v2497_v14 }
 0x2f7   :  { %2434 = vrot.lane.b32.xlu0 %v2433_v6, %s2494_s24  ;;  %v2290_v6 = vpack.c.bf16 %v1582_v32, %v1581_v11  ;;  %v1650_v11 = vld [vmem:[%s3889_s4 + $0x258] sm:$0xff] }
 0x308   :  { %v1263_v53 = vpop.permute.xlu0 %1262 }
 0x309   :  { %v3528_v48 = vmax.f32 %v1254_v57, %v1263_v53 }
 0x30b   :  { %v2438_v18 = vpack.i.bf16 %v3528_v48, %v3524_v21  ;;  %v2425_v62 = vpop.permute.xlu1 %2424 }
 0x30c   :  { %v2427_v46 = vunpack.i.h.bf16 %v2425_v62  ;;  %v2426_v36 = vunpack.i.l.bf16 %v2425_v62  ;;  %v1602_v62 = vld [vmem:[%s3889_s4 + $0xd8] sm:$0xff] }
 0x30d   :  { %2439 = vrot.lane.b32.xlu0 %v2438_v18, %s2494_s24  ;;  %v1601_v18 = vld [vmem:[%s3889_s4 + $0xd0] sm:$0xff] }
 0x30e   :  { %v1265_v1 = vsel %vm635_vm0, %v2427_v46, %v1263_v53  ;;  %v1264_v13 = vsel %vm635_vm0, %v2426_v36, %v2427_v46  ;;  %v2292_v53 = vpack.c.bf16 %v1600_v23, %v1599_v15 }
 0x30f   :  { %v3537_v26 = vmax.f32 %v1253_v8, %v1265_v1  ;;  %v3541_v12 = vmax.f32 %v1252_v17, %v1264_v13  ;;  %v1591_v17 = vld [vmem:[%s3889_s4 + $0x80] sm:$0xff]  ;;  %v2296_v1 = vpack.c.bf16 %v1602_v62, %v1601_v18  ;;  %v1585_v13 = vld [vmem:[%s3889_s4 + $0x50] sm:$0xff]  ;;  %v1660_v18 = vld [vmem:[%s3889_s4 + $0x2a8] sm:$0xff] }
 0x310   :  { %v2276_v22 = vpack.c.bf16 %v1592_v56, %v1591_v17  ;;  %v1588_v17 = vld [vmem:[%s3889_s4 + $0x68] sm:$0xff] }
 0x311   :  { %v2443_v38 = vpack.i.bf16 %v3537_v26, %v3541_v12 }
 0x312   :  { %2277 = vmatprep.subr.bf16.mxu1 %v2276_v22  ;;  %v1606_v22 = vld [vmem:[%s3889_s4 + $0xf8] sm:$0xff] }
 0x313   :  { %2444 = vrot.lane.b32.xlu1 %v2443_v38, %s2494_s24  ;;  %v1586_v38 = vld [vmem:[%s3889_s4 + $0x58] sm:$0xff] }
 0x316   :  { %v1481_v57 = vpop.permute.xlu1 %1480 }
 0x319   :  { %v1483_v60 = vpop.permute.xlu0 %1482 }
 0x31a   :  { %v1486_v50 = vsel %vm635_vm0, %v1481_v57, %v1483_v60  ;;  %v1485_v49 = vpop.permute.xlu1 %1484  ;;  %v1603_v57 = vld [vmem:[%s3889_s4 + $0xe0] sm:$0xff] }
 0x31b   :  { %v3549_v40 = vmax.f32 %v1474_v4, %v1486_v50  ;;  %v1487_v37 = vsel %vm635_vm0, %v1483_v60, %v1485_v49  ;;  %v3560_v31 = vmax.f32 %v1476_v29, %v1485_v49  ;;  %v1575_v4 = vld [vmem:[%s3889_s4] sm:$0xff]  ;;  %v1593_v29 = vld [vmem:[%s3889_s4 + $0x90] sm:$0xff]  ;;  %v1604_v60 = vld [vmem:[%s3889_s4 + $0xe8] sm:$0xff]  ;;  %v2298_v50 = vpack.c.bf16 %v1586_v38, %v1585_v13 }
 0x31c   :  { %v3552_v8 = vmax.f32 %v1475_v39, %v1487_v37  ;;  %v2278_v39 = vpack.c.bf16 %v1576_v9, %v1575_v4  ;;  %v2280_v10 = vpack.c.bf16 %v1594_v20, %v1593_v29  ;;  %v2300_v49 = vpack.c.bf16 %v1604_v60, %v1603_v57  ;;  %v1587_v37 = vld [vmem:[%s3889_s4 + $0x60] sm:$0xff]  ;;  %v1605_v4 = vld [vmem:[%s3889_s4 + $0xf0] sm:$0xff]  ;;  %v1590_v20 = vld [vmem:[%s3889_s4 + $0x78] sm:$0xff] }
 0x31d   :  { %1495 = vrot.lane.b32.xlu1 %v3549_v40, %s2494_s24  ;;  %v2302_v56 = vpack.c.bf16 %v1588_v17, %v1587_v37  ;;  %v1589_v9 = vld [vmem:[%s3889_s4 + $0x70] sm:$0xff]  ;;  %v2304_v29 = vpack.c.bf16 %v1606_v22, %v1605_v4  ;;  %v1662_v13 = vld [vmem:[%s3889_s4 + $0x2b8] sm:$0xff]  ;;  %v1663_v37 = vld [vmem:[%s3889_s4 + $0x2c0] sm:$0xff] }
 0x31e   :  { %1500 = vrot.lane.b32.xlu0 %v3552_v8, %s2494_s24  ;;  %2279 = vmatpush3.bf16.msra.mxu1 %v2278_v39  ;;  %v1645_v39 = vld [vmem:[%s3889_s4 + $0x230] sm:$0xff]  ;;  %v2306_v5 = vpack.c.bf16 %v1590_v20, %v1589_v9  ;;  %v1664_v17 = vld [vmem:[%s3889_s4 + $0x2c8] sm:$0xff] }
 0x31f   :  { %2281 = vmatprep.subr.bf16.mxu1 %v2280_v10  ;;  %v1646_v10 = vld [vmem:[%s3889_s4 + $0x238] sm:$0xff]  ;;  %v1665_v9 = vld [vmem:[%s3889_s4 + $0x2d0] sm:$0xff] }
 0x320   :  { %v2350_v47 = vpack.c.bf16 %v1646_v10, %v1645_v39 }
 0x321   :  { %1505 = vrot.lane.b32.xlu1 %v3560_v31, %s2494_s24 }
 0x322   :  { %2283 = vmatpush3.bf16.msra.mxu1 %v2282_v16  ;;  %v2308_v16 = vpack.c.bf16 %v1624_v33, %v1623_v3 }
 0x323   :  { %2285 = vmatprep.subr.bf16.mxu1 %v2284_v42  ;;  %v1647_v42 = vld [vmem:[%s3889_s4 + $0x240] sm:$0xff] }
 0x324   :  { %v2353_v35 = vpack.c.bf16 %v1648_v27, %v1647_v42 }
 0x326   :  { %2287 = vmatpush3.bf16.msra.mxu1 %v2286_v30 }
 0x327   :  { %2289 = vmatprep.subr.bf16.mxu1 %v2288_v41  ;;  %v1649_v41 = vld [vmem:[%s3889_s4 + $0x250] sm:$0xff] }
 0x328   :  { %v2356_v32 = vpack.c.bf16 %v1650_v11, %v1649_v41  ;;  %v1628_v41 = vld [vmem:[%s3889_s4 + $0x1a8] sm:$0xff] }
 0x329   :  { %v815_v45 = vpop.permute.xlu0 %814 }
 0x32a   :  { %v820_v19 = vsel %vm635_vm0, %v815_v45, %v2421_v63  ;;  %v1644_v63 = vld [vmem:[%s3889_s4 + $0x228] sm:$0xff]  ;;  %2291 = vmatpush3.bf16.msra.mxu1 %v2290_v6  ;;  %v1657_v6 = vld [vmem:[%s3889_s4 + $0x290] sm:$0xff]  ;;  %vm1569_vm0 = vcmask 302080  }
 0x32b   :  { %v3636_v0 = vmax.f32 %v808_v2, %v820_v19  ;;  %v1584_v2 = vld [vmem:[%s3889_s4 + $0x48] sm:$0xff]  ;;  %v2347_v46 = vpack.c.bf16 %v1644_v63, %v1643_v58  ;;  %2293 = vmatprep.subr.bf16.mxu1 %v2292_v53  ;;  %v1658_v53 = vld [vmem:[%s3889_s4 + $0x298] sm:$0xff] }
 0x32c   :  { %v2294_v36 = vpack.c.bf16 %v1584_v2, %v1583_v24  ;;  %v1652_v19 = vld [vmem:[%s3889_s4 + $0x268] sm:$0xff]  ;;  %v2368_v24 = vpack.c.bf16 %v1658_v53, %v1657_v6  ;;  %v1659_v2 = vld [vmem:[%s3889_s4 + $0x2a0] sm:$0xff] }
 0x32d   :  { %829 = vrot.lane.b32.xlu0 %v3636_v0, %s2494_s24  ;;  %2348 = vmatpush1.bf16.msra.mxu0 %v2347_v46  ;;  %v2359_v15 = vpack.c.bf16 %v1652_v19, %v1651_v52  ;;  %v1656_v58 = vld [vmem:[%s3889_s4 + $0x288] sm:$0xff]  ;;  %v2371_v62 = vpack.c.bf16 %v1660_v18, %v1659_v2  ;;  %v1629_v52 = vld [vmem:[%s3889_s4 + $0x1b0] sm:$0xff]  ;;  %v1630_v19 = vld [vmem:[%s3889_s4 + $0x1b8] sm:$0xff] }
 0x32e   :  { %2349 = vmatprep.subr.bf16.mxu0 %v2497_v14  ;;  %2295 = vmatpush3.bf16.msra.mxu1 %v2294_v36  ;;  %v2365_v63 = vpack.c.bf16 %v1656_v58, %v1655_v44  ;;  %v1631_v44 = vld [vmem:[%s3889_s4 + $0x1c0] sm:$0xff]  ;;  %v1632_v58 = vld [vmem:[%s3889_s4 + $0x1c8] sm:$0xff]  ;;  %v1633_v2 = vld [vmem:[%s3889_s4 + $0x1d0] sm:$0xff] }
 0x32f   :  { %2297 = vmatprep.subr.bf16.mxu1 %v2296_v1  ;;  %v1661_v1 = vld [vmem:[%s3889_s4 + $0x2b0] sm:$0xff]  ;;  %v2324_v6 = vpack.c.bf16 %v1632_v58, %v1631_v44  ;;  %v1615_v53 = vld [vmem:[%s3889_s4 + $0x140] sm:$0xff]  ;;  %v1634_v18 = vld [vmem:[%s3889_s4 + $0x1d8] sm:$0xff] }
 0x330   :  { %v2374_v57 = vpack.c.bf16 %v1662_v13, %v1661_v1  ;;  %v1618_v1 = vld [vmem:[%s3889_s4 + $0x158] sm:$0xff]  ;;  %v1635_v13 = vld [vmem:[%s3889_s4 + $0x1e0] sm:$0xff] }
 0x331   :  { %2351 = vmatpush1.bf16.msra.mxu0 %v2350_v47 }
 0x332   :  { %2299 = vmatpush3.bf16.msra.mxu1 %v2298_v50  ;;  %2352 = vmatprep.subr.bf16.mxu0 %v2497_v14 }
 0x333   :  { %2301 = vmatprep.subr.bf16.mxu1 %v2300_v49 }
 0x335   :  { %2354 = vmatpush1.bf16.msra.mxu0 %v2353_v35 }
 0x336   :  { %2303 = vmatpush3.bf16.msra.mxu1 %v2302_v56  ;;  %2355 = vmatprep.subr.bf16.mxu0 %v2497_v14 }
 0x337   :  { %2305 = vmatprep.subr.bf16.mxu1 %v2304_v29  ;;  %v1666_v29 = vld [vmem:[%s3889_s4 + $0x2d8] sm:$0xf] }
 0x338   :  { %v2380_v20 = vpack.c.bf16 %v1666_v29, %v1665_v9  ;;  %v1621_v9 = vld [vmem:[%s3889_s4 + $0x170] sm:$0xff]  ;;  %v1622_v29 = vld [vmem:[%s3889_s4 + $0x178] sm:$0xff] }
 0x339   :  { %2357 = vmatpush1.bf16.msra.mxu0 %v2356_v32 }
 0x33a   :  { %2307 = vmatpush3.bf16.msra.mxu1 %v2306_v5  ;;  %2358 = vmatprep.subr.bf16.mxu0 %v2497_v14 }
 0x33b   :  { %2309 = vmatprep.subr.bf16.mxu1 %v2308_v16  ;;  %v1626_v16 = vld [vmem:[%s3889_s4 + $0x198] sm:$0xff] }
 0x33d   :  { %2360 = vmatpush1.bf16.msra.mxu0 %v2359_v15 }
 0x33e   :  { %2361 = vmatprep.subr.bf16.mxu0 %v2497_v14 }
 0x368   :  { %v2430_v54 = vpop.permute.xlu1 %2429 }
 0x369   :  { %v2432_v59 = vunpack.i.h.bf16 %v2430_v54  ;;  %v2431_v34 = vunpack.i.l.bf16 %v2430_v54  ;;  %v2435_v7 = vpop.permute.xlu0 %2434 }
 0x36a   :  { %v2437_v28 = vunpack.i.h.bf16 %v2435_v7  ;;  %v2436_v45 = vunpack.i.l.bf16 %v2435_v7 }
 0x36b   :  { %v1054_v30 = vmax.f32 %v3499_v55, %v2432_v59  ;;  %v842_v43 = vmax.f32 %v3503_v25, %v2431_v34 }
 0x36c   :  { %v1059_v55 = vmax.f32 %v3510_v61, %v2437_v28  ;;  %v837_v25 = vmax.f32 %v3514_v51, %v2436_v45  ;;  %v1653_v61 = vld [vmem:[%s3889_s4 + $0x270] sm:$0xff]  ;;  %v1654_v51 = vld [vmem:[%s3889_s4 + $0x278] sm:$0xff]  ;;  %v1627_v45 = vld [vmem:[%s3889_s4 + $0x1a0] sm:$0xff] }
 0x36d   :  { %1514 = vrot.lane.b32.xlu1 %v842_v43, %s2498_s22  ;;  %1518 = vrot.lane.b32.xlu0 %v1054_v30, %s2499_s28  ;;  %v2362_v23 = vpack.c.bf16 %v1654_v51, %v1653_v61  ;;  %s2502_s22 = smov 49   ;;  %v1609_v43 = vld [vmem:[%s3889_s4 + $0x110] sm:$0xff]  ;;  %v1610_v28 = vld [vmem:[%s3889_s4 + $0x118] sm:$0xff]  ;;  %v2316_v32 = vpack.c.bf16 %v1628_v41, %v1627_v45  ;;  %v2320_v61 = vpack.c.bf16 %v1630_v19, %v1629_v52 }
 0x36e   :  { %v2314_v11 = vpack.c.bf16 %v1610_v28, %v1609_v43  ;;  %v1613_v51 = vld [vmem:[%s3889_s4 + $0x130] sm:$0xff] }
 0x36f   :  { %2363 = vmatpush1.bf16.msra.mxu0 %v2362_v23  ;;  %v1614_v23 = vld [vmem:[%s3889_s4 + $0x138] sm:$0xff] }
 0x370   :  { %2364 = vmatprep.subr.bf16.mxu0 %v2497_v14 }
 0x371   :  { %1522 = vrot.lane.b32.xlu0 %v1059_v55, %s2500_s0  ;;  %1510 = vrot.lane.b32.xlu1 %v837_v25, %s2501_s29  ;;  %v1611_v55 = vld [vmem:[%s3889_s4 + $0x120] sm:$0xff]  ;;  %v1612_v25 = vld [vmem:[%s3889_s4 + $0x128] sm:$0xff] }
 0x372   :  { %v2318_v15 = vpack.c.bf16 %v1612_v25, %v1611_v55 }
 0x373   :  { %2366 = vmatpush1.bf16.msra.mxu0 %v2365_v63  ;;  %v2322_v63 = vpack.c.bf16 %v1614_v23, %v1613_v51 }
 0x374   :  { %2367 = vmatprep.subr.bf16.mxu0 %v2497_v14 }
 0x377   :  { %2369 = vmatpush1.bf16.msra.mxu0 %v2368_v24  ;;  %v1616_v24 = vld [vmem:[%s3889_s4 + $0x148] sm:$0xff] }
 0x378   :  { %2370 = vmatprep.subr.bf16.mxu0 %v2497_v14 }
 0x37b   :  { %2372 = vmatpush1.bf16.msra.mxu0 %v2371_v62  ;;  %v2326_v62 = vpack.c.bf16 %v1616_v24, %v1615_v53 }
 0x37c   :  { %2373 = vmatprep.subr.bf16.mxu0 %v2497_v14 }
 0x37f   :  { %v2440_v46 = vpop.permute.xlu0 %2439  ;;  %2375 = vmatpush1.bf16.msra.mxu0 %v2374_v57 }
 0x380   :  { %v2441_v36 = vunpack.i.l.bf16 %v2440_v46  ;;  %2376 = vmatprep.subr.bf16.mxu0 %v2497_v14  ;;  %v2442_v56 = vunpack.i.h.bf16 %v2440_v46  ;;  %v2328_v46 = vpack.c.bf16 %v1634_v18, %v1633_v2 }
 0x382   :  { %v1064_v38 = vmax.f32 %v3524_v21, %v2441_v36  ;;  %v2377_v21 = vpack.c.bf16 %v1664_v17, %v1663_v37  ;;  %v1286_v39 = vmax.f32 %v3528_v48, %v2442_v56  ;;  %v1617_v36 = vld [vmem:[%s3889_s4 + $0x150] sm:$0xff] }
 0x383   :  { %v2330_v57 = vpack.c.bf16 %v1618_v1, %v1617_v36  ;;  %v1637_v17 = vld [vmem:[%s3889_s4 + $0x1f0] sm:$0xff] }
 0x384   :  { %1526 = vrot.lane.b32.xlu1 %v1064_v38, %s2502_s22  ;;  %2378 = vmatpush1.bf16.msra.mxu0 %v2377_v21  ;;  %v1636_v38 = vld [vmem:[%s3889_s4 + $0x1e8] sm:$0xff]  ;;  %v1638_v21 = vld [vmem:[%s3889_s4 + $0x1f8] sm:$0xff] }
 0x385   :  { %v2445_v60 = vpop.permute.xlu1 %2444  ;;  %2379 = vmatprep.subr.bf16.mxu0 %v2497_v14 }
 0x386   :  { %v2447_v50 = vunpack.i.h.bf16 %v2445_v60  ;;  %v2446_v49 = vunpack.i.l.bf16 %v2445_v60  ;;  %v2332_v60 = vpack.c.bf16 %v1636_v38, %v1635_v13 }
 0x388   :  { %v1281_v4 = vmax.f32 %v3537_v26, %v2447_v50  ;;  %v1276_v22 = vmax.f32 %v3541_v12, %v2446_v49  ;;  %2382 = vmatpush1.bf16.msk.msra.mxu0 %vm2381_vm7, %v2380_v20  ;;  %v1619_v50 = vld [vmem:[%s3889_s4 + $0x160] sm:$0xff]  ;;  %v1620_v49 = vld [vmem:[%s3889_s4 + $0x168] sm:$0xff] }
 0x389   :  { %v2334_v56 = vpack.c.bf16 %v1620_v49, %v1619_v50 }
 0x38a   :  { %1534 = vrot.lane.b32.xlu0 %v1281_v4, %s2503_s7  ;;  %1530 = vrot.lane.b32.xlu1 %v1276_v22, %s2504_s8  ;;  %v2336_v22 = vpack.c.bf16 %v1638_v21, %v1637_v17 }
 0x38e   :  { %1538 = vrot.lane.b32.xlu0 %v1286_v39, %s2506_s9  ;;  %v2338_v39 = vpack.c.bf16 %v1622_v29, %v1621_v9 }
 0x38f   :  { %v1496_v26 = vpop.permute.xlu1 %1495 }
 0x390   :  { %v1498_v12 = vmax.f32 %v3549_v40, %v1496_v26  ;;  %v1501_v10 = vpop.permute.xlu0 %1500  ;;  %v1607_v40 = vld [vmem:[%s3889_s4 + $0x100] sm:$0xff] }
 0x391   :  { %v1503_v5 = vmax.f32 %v3552_v8, %v1501_v10  ;;  %v1608_v8 = vld [vmem:[%s3889_s4 + $0x108] sm:$0xff] }
 0x392   :  { %1542 = vrot.lane.b32.xlu1 %v1498_v12, %s2507_s3  ;;  %v2310_v59 = vpack.c.bf16 %v1608_v8, %v1607_v40 }
 0x393   :  { %1546 = vrot.lane.b32.xlu0 %v1503_v5, %s2508_s10  ;;  %v1506_v47 = vpop.permute.xlu1 %1505 }
 0x394   :  { %v1508_v48 = vmax.f32 %v3560_v31, %v1506_v47  ;;  %v1625_v31 = vld [vmem:[%s3889_s4 + $0x190] sm:$0xff] }
 0x395   :  { %v2312_v30 = vpack.c.bf16 %v1626_v16, %v1625_v31 }
 0x396   :  { %1550 = vrot.lane.b32.xlu1 %v1508_v48, %s2509_s11 }
 0x39f   :  { %v830_v14 = vpop.permute.xlu0 %829 }
 0x3a0   :  { %v832_v42 = vmax.f32 %v3636_v0, %v830_v14 }
 0x3df   :  { %v1515_v3 = vpop.permute.xlu1 %1514  ;;  %v1519_v33 = vpop.permute.xlu0 %1518 }
 0x3e0   :  { %v1558_v27 = vsel %vm1557_vm8, %v1515_v3, %v1519_v33 }
 0x3e3   :  { %v3797_v54 = vpop.permute.xlu0 %1522  ;;  %v1511_v35 = vpop.permute.xlu1 %1510 }
 0x3e4   :  { %v1554_v34 = vsel %vm1553_vm9, %v832_v42, %v1511_v35  ;;  %v1560_v7 = vsel %vm1559_vm10, %v1558_v27, %v3797_v54  ;;  %v1947_v27 = vld [vmem:[%s3890_s5] ss:$0 sm:$0xff] }
 0x3e5   :  { %1746 = vmatprep.mubr.f32.mxu1 %v1560_v7  ;;  %v1556_v0 = vsel %vm1555_vm11, %v1554_v34, %v1515_v3 }
 0x3e6   :  { %1747 = vmatmul.mubr.f32.vlgmr.msra.gmra.mrb[2].mxu1 %v1556_v0 }
 0x3e7   :  { %2311 = vmatpush3.bf16.msra.mxu1 %v2310_v59 }
 0x3e8   :  { %2313 = vmatprep.subr.bf16.mxu1 %v2312_v30 }
 0x3eb   :  { %2315 = vmatpush3.bf16.msra.mxu1 %v2314_v11 }
 0x3ec   :  { %2317 = vmatprep.subr.bf16.mxu1 %v2316_v32 }
 0x3ef   :  { %2319 = vmatpush3.bf16.msra.mxu1 %v2318_v15 }
 0x3f0   :  { %2321 = vmatprep.subr.bf16.mxu1 %v2320_v61 }
 0x3f3   :  { %2323 = vmatpush3.bf16.msra.mxu1 %v2322_v63 }
 0x3f4   :  { %2325 = vmatprep.subr.bf16.mxu1 %v2324_v6 }
 0x3f6   :  { %v1527_v37 = vpop.permute.xlu1 %1526 }
 0x3f7   :  { %2327 = vmatpush3.bf16.msra.mxu1 %v2326_v62  ;;  %v1562_v5 = vsel %vm1561_vm14, %v3797_v54, %v1527_v37 }
 0x3f8   :  { %2329 = vmatprep.subr.bf16.mxu1 %v2328_v46 }
 0x3fb   :  { %2331 = vmatpush3.bf16.msra.mxu1 %v2330_v57 }
 0x3fc   :  { %2333 = vmatprep.subr.bf16.mxu1 %v2332_v60  ;;  %v1535_v4 = vpop.permute.xlu0 %1534  ;;  %v1531_v20 = vpop.permute.xlu1 %1530 }
 0x3fd   :  { %v1566_v26 = vsel %vm1565_vm12, %v1531_v20, %v1535_v4  ;;  %v1564_v48 = vsel %vm1563_vm15, %v1562_v5, %v1531_v20 }
 0x3ff   :  { %2335 = vmatpush3.bf16.msra.mxu1 %v2334_v56 }
 0x400   :  { %2337 = vmatprep.subr.bf16.mxu1 %v2336_v22  ;;  %v1539_v12 = vpop.permute.xlu0 %1538 }
 0x401   :  { %v1568_v10 = vsel %vm1567_vm13, %v1566_v26, %v1539_v12 }
 0x402   :  { %1816 = vmatprep.mubr.f32.mxu1 %v1568_v10 }
 0x403   :  { %2339 = vmatpush3.bf16.msra.mxu1 %v2338_v39 }
 0x404   :  { %v1543_v47 = vpop.permute.xlu1 %1542 }
 0x405   :  { %v1547_v14 = vpop.permute.xlu0 %1546  ;;  %v1570_v3 = vsel %vm1569_vm0, %v1539_v12, %v1543_v47 }
 0x406   :  { %1817 = vmatmul.mubr.f32.vlgmr.msra.gmra.mrb[4].mxu1 %v1564_v48  ;;  %v1572_v8 = vsel %vm1571_vm3, %v1570_v3, %v1547_v14 }
 0x408   :  { %v1551_v33 = vpop.permute.xlu1 %1550 }
 0x409   :  { %v1574_v40 = vsel %vm1573_vm1, %v1547_v14, %v1551_v33 }
 0x40a   :  { %1949 = vmatprep.mubr.msk.f32.mxu0 %vm1674_vm2, %v1574_v40 }
 0x40b   :  { %1887 = vmatmul.mubr.f32.vlgmr.msra.gmra.mrb[2].mxu0 %v1572_v8 }
 0x4b9   :  { %v1982_v31 = vpop.f32.mrb[2].mxu1 }
 0x4ba   :  { %v1983_v16 = vpop.f32.mrb[3].mxu1 }
 0x4bb   :  { %v1984_v42 = vadd.f32 %v1983_v16, %v1982_v31 }
 0x4bd   :  { %v1749_v59 = vadd.f32 %v1984_v42, %v1947_v27 }
 0x4d9   :  { %v2017_v54 = vpop.f32.mrb[4].mxu1 }
 0x4da   :  { %v2018_v35 = vpop.f32.mrb[5].mxu1 }
 0x4db   :  { %v2019_v34 = vadd.f32 %v2018_v35, %v2017_v54 }
 0x4dd   :  { %v1819_v7 = vadd.f32 %v2019_v34, %v1749_v59 }
 0x4de   :  { %v1888_v30 = vpop.f32.mrb[2].mxu0 }
 0x4df   :  { %v1889_v43 = vadd.f32 %v1888_v30, %v1819_v7  ;;  %v1890_v28 = vpop.f32.mrb[3].mxu0 }
 0x4e1   :  { %v1892_v0 = vmax.f32 %v1889_v43, 0.0 }
 0x4e3   :  { %v1893_v45 = vmul.f32 %v1892_v0, %v1892_v0 }
 0x4e5   :  { %v1895_v41 = vsel %vm1894_vm4, %v1893_v45, 0.0 }
 0x4e6   :  { %1896 = vadd.xlane.f32.xlu0 %v1895_v41 }
 0x573   :  { %v1897_v11 = vpop.xlane.xlu0 %1896 }
 0x574   :  { %v1898_v32 = vmax.f32 %v1897_v11, 1e-24 }
 0x576   :  { %2448 = vrsqrt.f32 %v1898_v32 }
 0x580   :  { %v2449_v55 = vpop.eup %2448 }
 0x581   :  { %v1900_v25 = vmul.f32 %v2449_v55, %v1892_v0 }
 0x583   :  { %1901 = vst.msk [vmem:[%s3891_s6] sm:$0xff] %vm1894_vm4, %v1900_v25 }
 0x584   :  { %1906 = vsyncpa [#allocation3], 1 }
 0x585   :  { %1907 = vsyncpa [#allocation4], 1 }

</bundles_post_ra>
